<compile_context>
chip_gen: v6e
topology: v6e:2x2x1
jax: 0.10.0
libtpu: 0.0.40
codegen_flags: <defaults>
</compile_context>

<pallas_src>
import math

import jax
import jax.numpy as jnp
from jax.experimental import pallas as pl
from jax.experimental.pallas import tpu as pltpu

STATE_DIM = 10
HIDDEN_DIM = 64
ACTION_DIM = 4
PAD = 128           # lane-dense feature / logit width used inside the kernel
NEG_PAD = -1e30     # bias for padded logit columns (masked out of softmax)


# ----------------------------------------------------------------------------
# Kernel: TB graphs (TB*n node rows) per grid step.
# ----------------------------------------------------------------------------
def _multi_agent_kernel(a_ref, d_ref, x_ref, w_ref, b_ref, o_ref):
    a = a_ref[0]                      # (R, R)   bf16 block-diagonal (A + I)
    d = d_ref[0]                      # (R, 1)   f32  D^{-1/2} per node row
    h = x_ref[...]                    # (R, 128) bf16 node features (cols >= STATE_DIM are 0)

    # --- two GCNConv layers: relu(d * ((A+I) @ (d * (H @ W))) + b) -----------
    for layer in range(2):
        hw = jnp.dot(h, w_ref[layer], preferred_element_type=jnp.float32)   # bf16 x bf16 -> f32
        hs = (d * hw).astype(jnp.bfloat16)                                   # pre-scale rows
        agg = jnp.dot(a, hs, preferred_element_type=jnp.float32)             # block-diag aggregate
        h = jnp.maximum(d * agg + b_ref[layer], 0.0).astype(jnp.bfloat16)    # post-scale+bias+ReLU

    # --- policy head: Linear -> ReLU -> Linear -> Softmax ---------------------
    p = jnp.dot(h, w_ref[2], preferred_element_type=jnp.float32) + b_ref[2]
    p = jnp.maximum(p, 0.0).astype(jnp.bfloat16)
    logits = jnp.dot(p, w_ref[3], preferred_element_type=jnp.float32) + b_ref[3]
    # padded logit columns carry -1e30 bias -> exp underflows to 0, so softmax over
    # 128 lanes == softmax over the first ACTION_DIM lanes.
    m = jnp.max(logits, axis=-1, keepdims=True)
    e = jnp.exp(logits - m)
    denom = jnp.sum(e, axis=-1, keepdims=True)
    o_ref[...] = e / denom            # exact divide -> row sums ~1e-6


# ----------------------------------------------------------------------------
# Glue: adjacency parts, parameter packing, wrappers.
# ----------------------------------------------------------------------------
def gcn_adjacency_parts(edge_index, num_nodes):
    """Returns (A + I) dense and d_inv_sqrt, matching PyG GCNConv defaults.

    edge_index: int32 (2, E), row 0 = source, row 1 = target.
    Note: duplicate edges produce entries > 1 (same as un-coalesced PyG input).
    """
    src, tgt = edge_index[0], edge_index[1]
    adj = jnp.zeros((num_nodes, num_nodes), jnp.float32)
    adj = adj.at[tgt, src].add(1.0)                       # A[t, s] = 1 for s -> t
    adj = adj + jnp.eye(num_nodes, dtype=jnp.float32)     # self-loops
    deg = jnp.sum(adj, axis=1)
    d_inv_sqrt = jnp.where(deg > 0, 1.0 / jnp.sqrt(deg), 0.0)
    return adj, d_inv_sqrt


def pack_params(params):
    """Pack all weights into one bf16 slab (MXU operands) + one f32 bias slab."""
    w = jnp.zeros((4, PAD, PAD), jnp.float32)
    w = w.at[0, :STATE_DIM, :HIDDEN_DIM].set(params["w1"])
    w = w.at[1, :HIDDEN_DIM, :HIDDEN_DIM].set(params["w2"])
    w = w.at[2, :HIDDEN_DIM, :HIDDEN_DIM].set(params["wp1"])
    w = w.at[3, :HIDDEN_DIM, :ACTION_DIM].set(params["wp2"])

    b = jnp.zeros((4, 1, PAD), jnp.float32)
    b = b.at[0, 0, :HIDDEN_DIM].set(params["b1"].reshape(-1))
    b = b.at[1, 0, :HIDDEN_DIM].set(params["b2"].reshape(-1))
    b = b.at[2, 0, :HIDDEN_DIM].set(params["bp1"].reshape(-1))
    b = b.at[3, 0, :ACTION_DIM].set(params["bp2"].reshape(-1))
    b = b.at[3, 0, ACTION_DIM:].set(NEG_PAD)              # mask pad logits
    return w.astype(jnp.bfloat16), b


def _choose_tb(batch, n, rows_target=128):
    """Graphs per grid step.  TB*n is kept a multiple of 8 (sublane-aligned) and
    targets ~128 MXU rows; never pads the batch more than necessary."""
    g = 8 // math.gcd(n, 8)                               # TB must be multiple of g
    tb = max(g, (max(1, rows_target // n) // g) * g)
    if batch <= tb:
        tb = max(g, ((batch + g - 1) // g) * g)
    return tb


def _block_diag(adjs):
    """(TB, n, n) -> (TB*n, TB*n) block-diagonal."""
    tb, n = adjs.shape[0], adjs.shape[1]
    eye = jnp.eye(tb, dtype=adjs.dtype)
    t = eye[:, None, :, None] * adjs[:, :, None, :]
    return t.reshape(tb * n, tb * n)


def multi_agent_forward_batched(x, edge_index, params, rows_target=128):
    """x: (B, N, STATE_DIM) f32; edge_index: (2, E) shared or (B, 2, E) per-graph."""
    bsz, n, s = x.shape
    tb = _choose_tb(bsz, n, rows_target)
    b_pad = -(-bsz // tb) * tb
    groups = b_pad // tb
    rows = tb * n

    shared = (edge_index.ndim == 2)
    if shared:
        # One resident block-diagonal (A+I) slab + D^{-1/2} vector, reused every step.
        adj, dinv = gcn_adjacency_parts(edge_index, n)
        a_bd = jnp.kron(jnp.eye(tb, dtype=jnp.float32), adj).astype(jnp.bfloat16)[None]
        d_bd = jnp.tile(dinv, tb).astype(jnp.float32)[None, :, None]
        a_map = lambda g: (0, 0, 0)
    else:
        adj, dinv = jax.vmap(lambda e: gcn_adjacency_parts(e, n))(edge_index)
        adj = jnp.pad(adj, ((0, b_pad - bsz), (0, 0), (0, 0)))
        dinv = jnp.pad(dinv, ((0, b_pad - bsz), (0, 0)))
        a_bd = jax.vmap(_block_diag)(adj.reshape(groups, tb, n, n)).astype(jnp.bfloat16)
        d_bd = dinv.reshape(groups, rows, 1).astype(jnp.float32)
        a_map = lambda g: (g, 0, 0)

    # bf16 node-feature stream, lane-dense (pad cols are zero), flattened to node rows.
    x_pad = jnp.zeros((bsz, n, PAD), jnp.bfloat16).at[:, :, :s].set(x.astype(jnp.bfloat16))
    x_pad = jnp.pad(x_pad, ((0, b_pad - bsz), (0, 0), (0, 0))).reshape(b_pad * n, PAD)

    w_slab, b_slab = pack_params(params)

    flops = groups * (4 * 2 * rows * PAD * PAD + 2 * 2 * rows * rows * PAD)
    bytes_accessed = (a_bd.size * 2 + d_bd.size * 4 + x_pad.size * 2
                      + w_slab.size * 2 + b_slab.size * 4 + b_pad * n * PAD * 4)
    transcendentals = b_pad * n * PAD

    grid_spec = pltpu.PrefetchScalarGridSpec(
        num_scalar_prefetch=0,
        grid=(groups,),
        in_specs=[
            pl.BlockSpec((1, rows, rows), a_map),           # block-diag (A+I)
            pl.BlockSpec((1, rows, 1), a_map),              # D^{-1/2}
            pl.BlockSpec((rows, PAD), lambda g: (g, 0)),    # node features (bf16)
            pl.BlockSpec((4, PAD, PAD), lambda g: (0, 0, 0)),  # weight slab (resident, bf16)
            pl.BlockSpec((4, 1, PAD), lambda g: (0, 0, 0)),    # bias slab (resident, f32)
        ],
        out_specs=pl.BlockSpec((rows, PAD), lambda g: (g, 0)),
    )

    out = pl.pallas_call(
        _multi_agent_kernel,
        out_shape=jax.ShapeDtypeStruct((b_pad * n, PAD), jnp.float32),
        grid_spec=grid_spec,
        compiler_params=pltpu.CompilerParams(
            dimension_semantics=("parallel",)),
        cost_estimate=pl.CostEstimate(
            flops=flops,
            transcendentals=transcendentals,
            bytes_accessed=bytes_accessed),
    )(a_bd, d_bd, x_pad, w_slab, b_slab)

    return out.reshape(b_pad, n, PAD)[:bsz, :, :ACTION_DIM]


def multi_agent_forward(x, edge_index, params):
    """Single-graph forward matching the PyTorch module: x (N, STATE_DIM) -> (N, ACTION_DIM)."""
    return multi_agent_forward_batched(x[None], edge_index, params)[0]


# ----------------------------------------------------------------------------
# Pure-JAX reference (for correctness checking).
# ----------------------------------------------------------------------------
def multi_agent_reference(x, edge_index, params):
    n = x.shape[0]
    adj, dinv = gcn_adjacency_parts(edge_index, n)
    a_hat = dinv[:, None] * adj * dinv[None, :]
    h = a_hat @ (x @ params["w1"]) + params["b1"]
    h = jnp.maximum(h, 0.0)
    h = a_hat @ (h @ params["w2"]) + params["b2"]
    h = jnp.maximum(h, 0.0)
    p = jnp.maximum(h @ params["wp1"] + params["bp1"], 0.0)
    logits = p @ params["wp2"] + params["bp2"]
    return jax.nn.softmax(logits, axis=-1)


def init_params(key):
    ks = jax.random.split(key, 8)

    def lin(k, fan_in, fan_out):
        bound = 1.0 / jnp.sqrt(fan_in)
        return jax.random.uniform(k, (fan_in, fan_out), jnp.float32, -bound, bound)

    return {
        "w1": lin(ks[0], STATE_DIM, HIDDEN_DIM),
        "b1": jnp.zeros((1, HIDDEN_DIM), jnp.float32),       # GCNConv bias init = 0
        "w2": lin(ks[1], HIDDEN_DIM, HIDDEN_DIM),
        "b2": jnp.zeros((1, HIDDEN_DIM), jnp.float32),
        "wp1": lin(ks[2], HIDDEN_DIM, HIDDEN_DIM),
        "bp1": jax.random.uniform(ks[3], (1, HIDDEN_DIM), jnp.float32,
                                  -1.0 / jnp.sqrt(HIDDEN_DIM), 1.0 / jnp.sqrt(HIDDEN_DIM)),
        "wp2": lin(ks[4], HIDDEN_DIM, ACTION_DIM),
        "bp2": jax.random.uniform(ks[5], (1, ACTION_DIM), jnp.float32,
                                  -1.0 / jnp.sqrt(HIDDEN_DIM), 1.0 / jnp.sqrt(HIDDEN_DIM)),
    }


if __name__ == "__main__":
    key = jax.random.PRNGKey(0)
    k_x, k_p = jax.random.split(key)

    num_agents = 8     # nodes per graph
    batch = 32         # envs / timesteps per call -> TB=16, grid=(2,), 128 MXU rows/step

    # batched node features: (B, N, state_dim)
    x = jax.random.normal(k_x, (batch, num_agents, STATE_DIM), jnp.float32)

    # deterministic bidirectional ring graph, shared across the batch
    src = jnp.arange(num_agents, dtype=jnp.int32)
    nxt = (src + 1) % num_agents
    edge_index = jnp.concatenate(
        [jnp.stack([src, nxt], axis=0), jnp.stack([nxt, src], axis=0)], axis=1
    )  # (2, 2N)

    params = init_params(k_p)

    fwd = jax.jit(multi_agent_forward_batched)
    actions = jax.block_until_ready(fwd(x, edge_index, params))
    assert actions.shape == (batch, num_agents, ACTION_DIM)

    # exact softmax divide -> rows sum to 1 tightly
    assert bool(jnp.all(jnp.abs(jnp.sum(actions, axis=-1) - 1.0) < 1e-3))

    # compare against a pure-JAX f32 reference (bf16 MXU operands -> loose atol)
    ref = jax.vmap(lambda xi: multi_agent_reference(xi, edge_index, params))(x)
    err = float(jnp.max(jnp.abs(actions - ref)))
    assert err < 5e-2, f"max abs err {err}"

    # per-graph edge_index path (B, 2, E) also works
    ei_b = jnp.broadcast_to(edge_index[None], (batch,) + edge_index.shape)
    actions2 = jax.block_until_ready(jax.jit(multi_agent_forward_batched)(x, ei_b, params))
    assert bool(jnp.allclose(actions2, ref, atol=5e-2))

    # single-graph API (matches the PyTorch module's forward) also works
    a0 = jax.block_until_ready(multi_agent_forward(x[0], edge_index, params))
    assert a0.shape == (num_agents, ACTION_DIM)
    assert bool(jnp.allclose(a0, ref[0], atol=5e-2))

    print("KERNEL_OK")
</pallas_src>

<mosaic_0001>
module attributes {stable_mosaic.version = 11 : i64} {
  func.func private @main(%arg0: i32) attributes {dimension_semantics = [#tpu.dimension_semantics<core_parallel>], iteration_bounds = array<i64: 2>, tpu.core_type = #tpu.core_type<sc_scalar_subcore>, window_params = []} {
    return
  }
}

module attributes {stable_mosaic.version = 11 : i64} {
  func.func private @main(%arg0: i32) attributes {dimension_semantics = [#tpu.dimension_semantics<core_parallel>], iteration_bounds = array<i64: 2>, tpu.core_type = #tpu.core_type<sc_scalar_subcore>, window_params = []} {
    return
  }
}

module attributes {stable_mosaic.version = 11 : i64} {
  func.func @_multi_agent_kernel(%arg0: i32, %arg1: memref<1x128x128xbf16, #tpu.memory_space<vmem>>, %arg2: memref<1x128x1xf32, #tpu.memory_space<vmem>>, %arg3: memref<128x128xbf16, #tpu.memory_space<vmem>>, %arg4: memref<4x128x128xbf16, #tpu.memory_space<vmem>>, %arg5: memref<4x1x128xf32, #tpu.memory_space<vmem>>, %arg6: memref<128x128xf32, #tpu.memory_space<vmem>>) attributes {dimension_semantics = [#tpu.dimension_semantics<parallel>], iteration_bounds = array<i64: 2>, scalar_prefetch = 0 : i64, scratch_operands = 0 : i64, tpu.core_type = #tpu.core_type<tc>, window_params = [{pipeline_mode = #tpu.pipeline_mode<synchronous>, transform_indices = @transform_0, window_bounds = array<i64: 1, 128, 128>}, {pipeline_mode = #tpu.pipeline_mode<synchronous>, transform_indices = @transform_1, window_bounds = array<i64: 1, 128, 1>}, {transform_indices = @transform_2, window_bounds = array<i64: 128, 128>}, {pipeline_mode = #tpu.pipeline_mode<synchronous>, transform_indices = @transform_3, window_bounds = array<i64: 4, 128, 128>}, {pipeline_mode = #tpu.pipeline_mode<synchronous>, transform_indices = @transform_4, window_bounds = array<i64: 4, 1, 128>}, {transform_indices = @transform_5, window_bounds = array<i64: 128, 128>}]} {
    %c0 = arith.constant 0 : index
    %c0_0 = arith.constant 0 : index
    %c0_1 = arith.constant 0 : index
    %0 = vector.load %arg1[%c0, %c0_0, %c0_1] : memref<1x128x128xbf16, #tpu.memory_space<vmem>>, vector<1x128x128xbf16>
    %1 = vector.shape_cast %0 : vector<1x128x128xbf16> to vector<128x128xbf16>
    %c0_2 = arith.constant 0 : index
    %c0_3 = arith.constant 0 : index
    %c0_4 = arith.constant 0 : index
    %2 = vector.load %arg2[%c0_2, %c0_3, %c0_4] : memref<1x128x1xf32, #tpu.memory_space<vmem>>, vector<1x128x1xf32>
    %3 = vector.shape_cast %2 : vector<1x128x1xf32> to vector<128x1xf32>
    %c0_5 = arith.constant 0 : index
    %c0_6 = arith.constant 0 : index
    %4 = vector.load %arg3[%c0_5, %c0_6] : memref<128x128xbf16, #tpu.memory_space<vmem>>, vector<128x128xbf16>
    %c0_7 = arith.constant 0 : index
    %c0_8 = arith.constant 0 : index
    %c0_9 = arith.constant 0 : index
    %5 = vector.load %arg4[%c0_7, %c0_8, %c0_9] : memref<4x128x128xbf16, #tpu.memory_space<vmem>>, vector<1x128x128xbf16>
    %6 = vector.shape_cast %5 : vector<1x128x128xbf16> to vector<128x128xbf16>
    %cst = arith.constant dense<0.000000e+00> : vector<128x128xf32>
    %7 = tpu.matmul %4, %6, %cst {dimension_numbers = #tpu.dot_dimension_numbers<[1], [0], [0], [1], [0, 0, 1, 1], [], []>} : vector<128x128xbf16>, vector<128x128xbf16>, vector<128x128xf32> -> vector<128x128xf32>
    %8 = vector.broadcast %3 : vector<128x1xf32> to vector<128x128xf32>
    %9 = arith.mulf %8, %7 : vector<128x128xf32>
    %10 = arith.truncf %9 : vector<128x128xf32> to vector<128x128xbf16>
    %cst_10 = arith.constant dense<0.000000e+00> : vector<128x128xf32>
    %11 = tpu.matmul %1, %10, %cst_10 {dimension_numbers = #tpu.dot_dimension_numbers<[1], [0], [0], [1], [0, 0, 1, 1], [], []>} : vector<128x128xbf16>, vector<128x128xbf16>, vector<128x128xf32> -> vector<128x128xf32>
    %12 = vector.broadcast %3 : vector<128x1xf32> to vector<128x128xf32>
    %13 = arith.mulf %12, %11 : vector<128x128xf32>
    %c0_11 = arith.constant 0 : index
    %c0_12 = arith.constant 0 : index
    %c0_13 = arith.constant 0 : index
    %14 = vector.load %arg5[%c0_11, %c0_12, %c0_13] : memref<4x1x128xf32, #tpu.memory_space<vmem>>, vector<1x1x128xf32>
    %15 = vector.shape_cast %14 : vector<1x1x128xf32> to vector<1x128xf32>
    %16 = vector.broadcast %15 : vector<1x128xf32> to vector<128x128xf32>
    %17 = arith.addf %13, %16 : vector<128x128xf32>
    %cst_14 = arith.constant 0.000000e+00 : f32
    %18 = vector.broadcast %cst_14 : f32 to vector<128x128xf32>
    %19 = arith.maximumf %17, %18 : vector<128x128xf32>
    %20 = arith.truncf %19 : vector<128x128xf32> to vector<128x128xbf16>
    %c1 = arith.constant 1 : index
    %c0_15 = arith.constant 0 : index
    %c0_16 = arith.constant 0 : index
    %21 = vector.load %arg4[%c1, %c0_15, %c0_16] : memref<4x128x128xbf16, #tpu.memory_space<vmem>>, vector<1x128x128xbf16>
    %22 = vector.shape_cast %21 : vector<1x128x128xbf16> to vector<128x128xbf16>
    %cst_17 = arith.constant dense<0.000000e+00> : vector<128x128xf32>
    %23 = tpu.matmul %20, %22, %cst_17 {dimension_numbers = #tpu.dot_dimension_numbers<[1], [0], [0], [1], [0, 0, 1, 1], [], []>} : vector<128x128xbf16>, vector<128x128xbf16>, vector<128x128xf32> -> vector<128x128xf32>
    %24 = vector.broadcast %3 : vector<128x1xf32> to vector<128x128xf32>
    %25 = arith.mulf %24, %23 : vector<128x128xf32>
    %26 = arith.truncf %25 : vector<128x128xf32> to vector<128x128xbf16>
    %cst_18 = arith.constant dense<0.000000e+00> : vector<128x128xf32>
    %27 = tpu.matmul %1, %26, %cst_18 {dimension_numbers = #tpu.dot_dimension_numbers<[1], [0], [0], [1], [0, 0, 1, 1], [], []>} : vector<128x128xbf16>, vector<128x128xbf16>, vector<128x128xf32> -> vector<128x128xf32>
    %28 = vector.broadcast %3 : vector<128x1xf32> to vector<128x128xf32>
    %29 = arith.mulf %28, %27 : vector<128x128xf32>
    %c1_19 = arith.constant 1 : index
    %c0_20 = arith.constant 0 : index
    %c0_21 = arith.constant 0 : index
    %30 = vector.load %arg5[%c1_19, %c0_20, %c0_21] : memref<4x1x128xf32, #tpu.memory_space<vmem>>, vector<1x1x128xf32>
    %31 = vector.shape_cast %30 : vector<1x1x128xf32> to vector<1x128xf32>
    %32 = vector.broadcast %31 : vector<1x128xf32> to vector<128x128xf32>
    %33 = arith.addf %29, %32 : vector<128x128xf32>
    %cst_22 = arith.constant 0.000000e+00 : f32
    %34 = vector.broadcast %cst_22 : f32 to vector<128x128xf32>
    %35 = arith.maximumf %33, %34 : vector<128x128xf32>
    %36 = arith.truncf %35 : vector<128x128xf32> to vector<128x128xbf16>
    %c2 = arith.constant 2 : index
    %c0_23 = arith.constant 0 : index
    %c0_24 = arith.constant 0 : index
    %37 = vector.load %arg4[%c2, %c0_23, %c0_24] : memref<4x128x128xbf16, #tpu.memory_space<vmem>>, vector<1x128x128xbf16>
    %38 = vector.shape_cast %37 : vector<1x128x128xbf16> to vector<128x128xbf16>
    %cst_25 = arith.constant dense<0.000000e+00> : vector<128x128xf32>
    %39 = tpu.matmul %36, %38, %cst_25 {dimension_numbers = #tpu.dot_dimension_numbers<[1], [0], [0], [1], [0, 0, 1, 1], [], []>} : vector<128x128xbf16>, vector<128x128xbf16>, vector<128x128xf32> -> vector<128x128xf32>
    %c2_26 = arith.constant 2 : index
    %c0_27 = arith.constant 0 : index
    %c0_28 = arith.constant 0 : index
    %40 = vector.load %arg5[%c2_26, %c0_27, %c0_28] : memref<4x1x128xf32, #tpu.memory_space<vmem>>, vector<1x1x128xf32>
    %41 = vector.shape_cast %40 : vector<1x1x128xf32> to vector<1x128xf32>
    %42 = vector.broadcast %41 : vector<1x128xf32> to vector<128x128xf32>
    %43 = arith.addf %39, %42 : vector<128x128xf32>
    %cst_29 = arith.constant 0.000000e+00 : f32
    %44 = vector.broadcast %cst_29 : f32 to vector<128x128xf32>
    %45 = arith.maximumf %43, %44 : vector<128x128xf32>
    %46 = arith.truncf %45 : vector<128x128xf32> to vector<128x128xbf16>
    %c3 = arith.constant 3 : index
    %c0_30 = arith.constant 0 : index
    %c0_31 = arith.constant 0 : index
    %47 = vector.load %arg4[%c3, %c0_30, %c0_31] : memref<4x128x128xbf16, #tpu.memory_space<vmem>>, vector<1x128x128xbf16>
    %48 = vector.shape_cast %47 : vector<1x128x128xbf16> to vector<128x128xbf16>
    %cst_32 = arith.constant dense<0.000000e+00> : vector<128x128xf32>
    %49 = tpu.matmul %46, %48, %cst_32 {dimension_numbers = #tpu.dot_dimension_numbers<[1], [0], [0], [1], [0, 0, 1, 1], [], []>} : vector<128x128xbf16>, vector<128x128xbf16>, vector<128x128xf32> -> vector<128x128xf32>
    %c3_33 = arith.constant 3 : index
    %c0_34 = arith.constant 0 : index
    %c0_35 = arith.constant 0 : index
    %50 = vector.load %arg5[%c3_33, %c0_34, %c0_35] : memref<4x1x128xf32, #tpu.memory_space<vmem>>, vector<1x1x128xf32>
    %51 = vector.shape_cast %50 : vector<1x1x128xf32> to vector<1x128xf32>
    %52 = vector.broadcast %51 : vector<1x128xf32> to vector<128x128xf32>
    %53 = arith.addf %49, %52 : vector<128x128xf32>
    %cst_36 = arith.constant dense<0xFF800000> : vector<128xf32>
    %54 = vector.multi_reduction <maximumf>, %53, %cst_36 [1] : vector<128x128xf32> to vector<128xf32>
    %55 = vector.shape_cast %54 : vector<128xf32> to vector<128x1xf32>
    %56 = vector.broadcast %55 : vector<128x1xf32> to vector<128x128xf32>
    %57 = arith.subf %53, %56 : vector<128x128xf32>
    %58 = math.exp %57 : vector<128x128xf32>
    %cst_37 = arith.constant dense<0.000000e+00> : vector<128xf32>
    %59 = vector.multi_reduction <add>, %58, %cst_37 [1] : vector<128x128xf32> to vector<128xf32>
    %60 = vector.shape_cast %59 : vector<128xf32> to vector<128x1xf32>
    %61 = vector.broadcast %60 : vector<128x1xf32> to vector<128x128xf32>
    %62 = arith.divf %58, %61 : vector<128x128xf32>
    %c0_38 = arith.constant 0 : index
    %c0_39 = arith.constant 0 : index
    %63 = vector.load %arg6[%c0_38, %c0_39] : memref<128x128xf32, #tpu.memory_space<vmem>>, vector<128x128xf32>
    tpu.vector_store %arg6[%c0_38, %c0_39], %62 {strides = array<i32>} : memref<128x128xf32, #tpu.memory_space<vmem>>, vector<128x128xf32>,
    return
  }
  func.func @transform_0(%arg0: i32) -> (i32, i32, i32) {
    %c0_i32 = arith.constant 0 : i32
    %c0_i32_0 = arith.constant 0 : i32
    %c0_i32_1 = arith.constant 0 : i32
    %c0_i32_2 = arith.constant 0 : i32
    return %c0_i32, %c0_i32_0, %c0_i32_1 : i32, i32, i32
  }
  func.func @transform_1(%arg0: i32) -> (i32, i32, i32) {
    %c0_i32 = arith.constant 0 : i32
    %c0_i32_0 = arith.constant 0 : i32
    %c0_i32_1 = arith.constant 0 : i32
    %c0_i32_2 = arith.constant 0 : i32
    return %c0_i32, %c0_i32_0, %c0_i32_1 : i32, i32, i32
  }
  func.func @transform_2(%arg0: i32) -> (i32, i32) {
    %c0_i32 = arith.constant 0 : i32
    %c0_i32_0 = arith.constant 0 : i32
    return %arg0, %c0_i32 : i32, i32
  }
  func.func @transform_3(%arg0: i32) -> (i32, i32, i32) {
    %c0_i32 = arith.constant 0 : i32
    %c0_i32_0 = arith.constant 0 : i32
    %c0_i32_1 = arith.constant 0 : i32
    %c0_i32_2 = arith.constant 0 : i32
    return %c0_i32, %c0_i32_0, %c0_i32_1 : i32, i32, i32
  }
  func.func @transform_4(%arg0: i32) -> (i32, i32, i32) {
    %c0_i32 = arith.constant 0 : i32
    %c0_i32_0 = arith.constant 0 : i32
    %c0_i32_1 = arith.constant 0 : i32
    %c0_i32_2 = arith.constant 0 : i32
    return %c0_i32, %c0_i32_0, %c0_i32_1 : i32, i32, i32
  }
  func.func @transform_5(%arg0: i32) -> (i32, i32) {
    %c0_i32 = arith.constant 0 : i32
    %c0_i32_0 = arith.constant 0 : i32
    return %arg0, %c0_i32 : i32, i32
  }
}

</mosaic_0001>

<bundles_post_ra>
// kernel: tile.8
= control target key start
LH: loop header
LB: loop body
LE: loop exit
PB: predicated region body
PF: predicated region fallthrough
CT: control target
= control target key end

     0   :  { %s28_s0 = inlined_call_operand.vmem [shape: f32[8], index: 0, kind: input, shape index: {}]   ;;  %s29_s1 = inlined_call_operand.vmem [shape: f32[16,8], index: 1, kind: output, shape index: {}]  }
   0x1   :  { %v4_v0 = vld [vmem:[%s28_s0] ss:$0 sm:$0xff] }
   0x2   :  { %5 = vst [vmem:[%s29_s1] sm:$0xff] %v4_v0  ;;  %8 = vst [vmem:[%s29_s1 + $0x8] sm:$0xff] %v4_v0 }

// kernel: tile.0
= control target key start
LH: loop header
LB: loop body
LE: loop exit
PB: predicated region body
PF: predicated region fallthrough
CT: control target
= control target key end

     0   :  { %vm3_vm0 = vcmask 7168   ;;  %s178_s10 = smov 127   ;;  %s179_s19 = smov 125   ;;  %s328_s0 = inlined_call_operand.vmem [shape: f32[16,8], index: 0, kind: input, shape index: {}]   ;;  %s329_s1 = inlined_call_operand.vmem [shape: f32[1,128,1], index: 1, kind: output, shape index: {}]  }
   0x1   :  { %v30_v0 = vld [vmem:[%s328_s0] sm:$0xff]   ;;  %v142_v1 = vld [vmem:[%s328_s0 + $0x8] sm:$0xff]   ;;  %s177_s0 = smov 126   ;;  %s180_s20 = smov 124  }
   0x2   :  { %31 = vrot.lane.b32.xlu1 %v30_v0, %s177_s0  ;;  %14 = vrot.lane.b32.xlu0 %v30_v0, %s178_s10  ;;  %4 = vst.msk [vmem:[%s329_s1] ss:$8 sm:$0xf] %vm3_vm0, %v30_v0   ;;  %5 = vst.msk [vmem:[%s329_s1] ss:$8 sm:$0xf0] %vm3_vm0, %v30_v0  }
   0x3   :  { %133 = vst.msk [vmem:[%s329_s1 + $0x40] ss:$8 sm:$0xf] %vm3_vm0, %v142_v1   ;;  %134 = vst.msk [vmem:[%s329_s1 + $0x40] ss:$8 sm:$0xf0] %vm3_vm0, %v142_v1  }
   0x4   :  { %s181_s21 = smov 123   ;;  %s182_s22 = smov 122  }
   0x5   :  { %s183_s23 = smov 121  }
   0x6   :  { %40 = vrot.lane.b32.xlu1 %v142_v1, %s177_s0  ;;  %23 = vrot.lane.b32.xlu0 %v142_v1, %s178_s10 }
   0xa   :  { %57 = vrot.lane.b32.xlu1 %v142_v1, %s179_s19  ;;  %48 = vrot.lane.b32.xlu0 %v30_v0, %s179_s19 }
   0xe   :  { %74 = vrot.lane.b32.xlu1 %v142_v1, %s180_s20  ;;  %65 = vrot.lane.b32.xlu0 %v30_v0, %s180_s20 }
  0x12   :  { %91 = vrot.lane.b32.xlu1 %v142_v1, %s181_s21  ;;  %82 = vrot.lane.b32.xlu0 %v30_v0, %s181_s21 }
  0x16   :  { %108 = vrot.lane.b32.xlu1 %v142_v1, %s182_s22  ;;  %99 = vrot.lane.b32.xlu0 %v30_v0, %s182_s22 }
  0x1a   :  { %125 = vrot.lane.b32.xlu1 %v142_v1, %s183_s23  ;;  %116 = vrot.lane.b32.xlu0 %v30_v0, %s183_s23 }
  0x74   :  { %v32_v2 = vpop.permute.xlu1 %31   ;;  %v15_v3 = vpop.permute.xlu0 %14  }
  0x75   :  { %140 = vst.msk [vmem:[%s329_s1 + $0x2] ss:$8 sm:$0xf] %vm3_vm0, %v32_v2   ;;  %141 = vst.msk [vmem:[%s329_s1 + $0x2] ss:$8 sm:$0xf0] %vm3_vm0, %v32_v2  }
  0x76   :  { %135 = vst.msk [vmem:[%s329_s1 + $0x1] ss:$8 sm:$0xf] %vm3_vm0, %v15_v3   ;;  %136 = vst.msk [vmem:[%s329_s1 + $0x1] ss:$8 sm:$0xf0] %vm3_vm0, %v15_v3  }
  0x78   :  { %v41_v4 = vpop.permute.xlu1 %40   ;;  %v24_v5 = vpop.permute.xlu0 %23  }
  0x79   :  { %143 = vst.msk [vmem:[%s329_s1 + $0x42] ss:$8 sm:$0xf] %vm3_vm0, %v41_v4   ;;  %144 = vst.msk [vmem:[%s329_s1 + $0x42] ss:$8 sm:$0xf0] %vm3_vm0, %v41_v4  }
  0x7a   :  { %138 = vst.msk [vmem:[%s329_s1 + $0x41] ss:$8 sm:$0xf] %vm3_vm0, %v24_v5   ;;  %139 = vst.msk [vmem:[%s329_s1 + $0x41] ss:$8 sm:$0xf0] %vm3_vm0, %v24_v5  }
  0x7c   :  { %v58_v6 = vpop.permute.xlu1 %57   ;;  %v49_v7 = vpop.permute.xlu0 %48  }
  0x7d   :  { %148 = vst.msk [vmem:[%s329_s1 + $0x43] ss:$8 sm:$0xf] %vm3_vm0, %v58_v6   ;;  %149 = vst.msk [vmem:[%s329_s1 + $0x43] ss:$8 sm:$0xf0] %vm3_vm0, %v58_v6  }
  0x7e   :  { %145 = vst.msk [vmem:[%s329_s1 + $0x3] ss:$8 sm:$0xf] %vm3_vm0, %v49_v7   ;;  %146 = vst.msk [vmem:[%s329_s1 + $0x3] ss:$8 sm:$0xf0] %vm3_vm0, %v49_v7  }
  0x80   :  { %v75_v8 = vpop.permute.xlu1 %74   ;;  %v66_v9 = vpop.permute.xlu0 %65  }
  0x81   :  { %153 = vst.msk [vmem:[%s329_s1 + $0x44] ss:$8 sm:$0xf] %vm3_vm0, %v75_v8   ;;  %154 = vst.msk [vmem:[%s329_s1 + $0x44] ss:$8 sm:$0xf0] %vm3_vm0, %v75_v8  }
  0x82   :  { %150 = vst.msk [vmem:[%s329_s1 + $0x4] ss:$8 sm:$0xf] %vm3_vm0, %v66_v9   ;;  %151 = vst.msk [vmem:[%s329_s1 + $0x4] ss:$8 sm:$0xf0] %vm3_vm0, %v66_v9  }
  0x84   :  { %v92_v10 = vpop.permute.xlu1 %91   ;;  %v83_v11 = vpop.permute.xlu0 %82  }
  0x85   :  { %158 = vst.msk [vmem:[%s329_s1 + $0x45] ss:$8 sm:$0xf] %vm3_vm0, %v92_v10   ;;  %159 = vst.msk [vmem:[%s329_s1 + $0x45] ss:$8 sm:$0xf0] %vm3_vm0, %v92_v10  }
  0x86   :  { %155 = vst.msk [vmem:[%s329_s1 + $0x5] ss:$8 sm:$0xf] %vm3_vm0, %v83_v11   ;;  %156 = vst.msk [vmem:[%s329_s1 + $0x5] ss:$8 sm:$0xf0] %vm3_vm0, %v83_v11  }
  0x88   :  { %v109_v12 = vpop.permute.xlu1 %108   ;;  %v100_v13 = vpop.permute.xlu0 %99  }
  0x89   :  { %163 = vst.msk [vmem:[%s329_s1 + $0x46] ss:$8 sm:$0xf] %vm3_vm0, %v109_v12   ;;  %164 = vst.msk [vmem:[%s329_s1 + $0x46] ss:$8 sm:$0xf0] %vm3_vm0, %v109_v12  }
  0x8a   :  { %160 = vst.msk [vmem:[%s329_s1 + $0x6] ss:$8 sm:$0xf] %vm3_vm0, %v100_v13   ;;  %161 = vst.msk [vmem:[%s329_s1 + $0x6] ss:$8 sm:$0xf0] %vm3_vm0, %v100_v13  }
  0x8c   :  { %v126_v14 = vpop.permute.xlu1 %125   ;;  %v117_v15 = vpop.permute.xlu0 %116  }
  0x8d   :  { %168 = vst.msk [vmem:[%s329_s1 + $0x47] ss:$8 sm:$0xf] %vm3_vm0, %v126_v14   ;;  %169 = vst.msk [vmem:[%s329_s1 + $0x47] ss:$8 sm:$0xf0] %vm3_vm0, %v126_v14  }
  0x8e   :  { %165 = vst.msk [vmem:[%s329_s1 + $0x7] ss:$8 sm:$0xf] %vm3_vm0, %v117_v15   ;;  %166 = vst.msk [vmem:[%s329_s1 + $0x7] ss:$8 sm:$0xf0] %vm3_vm0, %v117_v15  }

// kernel: multi_agent_forward_batched.1
= control target key start
LH: loop header
LB: loop body
LE: loop exit
PB: predicated region body
PF: predicated region fallthrough
CT: control target
= control target key end

     0   :  { %s2289_s18 = smov 0   ;;  %s2777_s0 = inlined_call_operand.vmem [shape: bf16[1,128,128], index: 0, kind: input, shape index: {}]   ;;  %s2778_s1 = inlined_call_operand.vmem [shape: f32[1,128,1], index: 1, kind: input, shape index: {}]   ;;  %s2779_s2 = inlined_call_operand.vmem [shape: bf16[256,128], index: 2, kind: input, shape index: {}]   ;;  %s2780_s3 = inlined_call_operand.vmem [shape: bf16[4,128,128], index: 3, kind: input, shape index: {}]   ;;  %s2781_s4 = inlined_call_operand.vmem [shape: f32[4,1,128], index: 4, kind: input, shape index: {}]   ;;  %s2782_s5 = inlined_call_operand.vmem [shape: f32[256,128], index: 5, kind: output, shape index: {}]  }
   0x1 LB: > { %s1725_s19 = sadd.s32 4294967295, %s2256_s18   ;;  %p1729_p0 = scmp.ge.s32.totalorder %s2256_s18, 1  ;;  %s2256_s18 = sphi %s2289_s18, %s15_s18  }
   0x2   : > { %p188_p1 = scmp.lt.s32.totalorder %s2256_s18, 3 }
   0x4   : > { %p189_p2 = pnand %p1729_p0, %p188_p1 }
   0x5   : > { %s1730_s22 = sshll.u32 (!%p189_p2), %s1725_s19, 4 }
   0x6   : > { %192 = sbr.rel (%p189_p2) target bundleno = 1722 (0x6ba), region = 40  ;;  %p217_p3 = scmp.lt.s32.totalorder (!%p189_p2), %s1730_s22, 31 }
   0xb   : > { %v2138_v0 = vld [vmem:[%s2780_s3 + $0x38] sm:$0xff]   ;;  %v2139_v1 = vld [vmem:[%s2780_s3 + $0x30] sm:$0xff]   ;;  %s2784_s22 = smov (!%p217_p3, %s1730_s22), 31  ;;  %v2258_v2 = vmov 0   ;;  %v2140_v3 = vld [vmem:[%s2780_s3 + $0x28] sm:$0xff]  }
   0xc   : > { %1935 = vmatprep.subr.bf16.mxu0 %v2138_v0  ;;  %2136 = vset.pattern.permute.xlu0 %v2258_v2  ;;  %s1731_s27 = sshll.u32 %s2784_s22, 2  ;;  %v2141_v4 = vld [vmem:[%s2780_s3 + $0x20] sm:$0xff]   ;;  %v2142_v6 = vld [vmem:[%s2780_s3 + $0x18] sm:$0xff]   ;;  %v2143_v7 = vld [vmem:[%s2780_s3 + $0x10] sm:$0xff]   ;;  %s1733_s7 = sshll.u32 %s2784_s22, 3 }
   0xd   : > { %1936 = vmatpush3.bf16.msra.mxu0 %v2138_v0  ;;  %2137 = vset.pattern.permute.xlu1 %v2258_v2  ;;  %s2312_s30 = scalar_lea.vmem %s2779_s2, %s1731_s27  ;;  %v259_v8 = vld [vmem:[%s2778_s1 + $0x70] sm:$0xff]  ;;  %v257_v9 = vld [vmem:[%s2778_s1 + $0x60] sm:$0xff]  ;;  %v260_v10 = vld [vmem:[%s2778_s1 + $0x78] sm:$0xff] }
   0xe   : > { %1937 = vmatprep.subr.bf16.mxu0 %v2139_v1  ;;  %v2146_v5 = vld [vmem:[%s2312_s30] sm:$0xff]   ;;  %558 = vperm.xlu0 %2136, %v259_v8   ;;  %v258_v11 = vld [vmem:[%s2778_s1 + $0x68] sm:$0xff]  ;;  %v255_v13 = vld [vmem:[%s2778_s1 + $0x50] sm:$0xff] }
   0xf   : > { %1951 = vmatprep.mubr.bf16.mxu0 %v2146_v5  ;;  %548 = vperm.xlu1 %2137, %v257_v9   ;;  %v2144_v12 = vld [vmem:[%s2780_s3 + $0x8] sm:$0xff]   ;;  %v256_v14 = vld [vmem:[%s2778_s1 + $0x58] sm:$0xff]  ;;  %v2145_v15 = vld [vmem:[%s2780_s3] sm:$0xff]  }
  0x10   : > { %v253_v16 = vld [vmem:[%s2778_s1 + $0x40] sm:$0xff]  ;;  %v254_v17 = vld [vmem:[%s2778_s1 + $0x48] sm:$0xff]  ;;  %v251_v19 = vld [vmem:[%s2778_s1 + $0x30] sm:$0xff] }
  0x11   : > { %1938 = vmatpush3.bf16.msra.mxu0 %v2139_v1  ;;  %v2147_v18 = vld [vmem:[%s2312_s30 + $0x8] sm:$0xff]   ;;  %v252_v20 = vld [vmem:[%s2778_s1 + $0x38] sm:$0xff]  ;;  %v2148_v21 = vld [vmem:[%s2312_s30 + $0x10] sm:$0xff]  }
  0x12   : > { %1939 = vmatprep.subr.bf16.mxu0 %v2140_v3  ;;  %563 = vperm.xlu0 %2136, %v260_v10   ;;  %v249_v22 = vld [vmem:[%s2778_s1 + $0x20] sm:$0xff]  ;;  %v250_v23 = vld [vmem:[%s2778_s1 + $0x28] sm:$0xff]  ;;  %v2149_v24 = vld [vmem:[%s2312_s30 + $0x18] sm:$0xff]  }
  0x13   : > { %553 = vperm.xlu1 %2137, %v258_v11   ;;  %v247_v25 = vld [vmem:[%s2778_s1 + $0x10] sm:$0xff]  ;;  %v248_v26 = vld [vmem:[%s2778_s1 + $0x18] sm:$0xff]  ;;  %v2150_v27 = vld [vmem:[%s2312_s30 + $0x20] sm:$0xff]  }
  0x14   : > { %v245_v28 = vld [vmem:[%s2778_s1] sm:$0xff]  ;;  %v246_v29 = vld [vmem:[%s2778_s1 + $0x8] sm:$0xff]  ;;  %v2152_v31 = vld [vmem:[%s2312_s30 + $0x30] sm:$0xff]  }
  0x15   : > { %1940 = vmatpush3.bf16.msra.mxu0 %v2140_v3  ;;  %v2151_v30 = vld [vmem:[%s2312_s30 + $0x28] sm:$0xff]   ;;  %v2153_v32 = vld [vmem:[%s2312_s30 + $0x38] sm:$0xff]   ;;  %v2388_v33 = vld [vmem:[%s2777_s0] sm:$0xff]   ;;  %s2740_s30 = scalar_lea.vmem %s2782_s5, %s1733_s7 }
  0x16   : > { %1941 = vmatprep.subr.bf16.mxu0 %v2141_v4  ;;  %538 = vperm.xlu0 %2136, %v255_v13   ;;  %v2162_v34 = vld [vmem:[%s2780_s3 + $0x78] sm:$0xff]   ;;  %v2163_v35 = vld [vmem:[%s2780_s3 + $0x70] sm:$0xff]   ;;  %v2164_v36 = vld [vmem:[%s2780_s3 + $0x68] sm:$0xff]  }
  0x17   : > { %543 = vperm.xlu1 %2137, %v256_v14   ;;  %1983 = vmatprep.mubr.bf16.mxu1 %v2388_v33  ;;  %v2165_v37 = vld [vmem:[%s2780_s3 + $0x60] sm:$0xff]  }
  0x19   : > { %1942 = vmatpush3.bf16.msra.mxu0 %v2141_v4 }
  0x1a   : > { %1943 = vmatprep.subr.bf16.mxu0 %v2142_v6  ;;  %528 = vperm.xlu0 %2136, %v253_v16  }
  0x1b   : > { %533 = vperm.xlu1 %2137, %v254_v17  }
  0x1d   : > { %1944 = vmatpush3.bf16.msra.mxu0 %v2142_v6 }
  0x1e   : > { %1945 = vmatprep.subr.bf16.mxu0 %v2143_v7  ;;  %518 = vperm.xlu0 %2136, %v251_v19  }
  0x1f   : > { %523 = vperm.xlu1 %2137, %v252_v20  }
  0x21   : > { %1946 = vmatpush3.bf16.msra.mxu0 %v2143_v7 }
  0x22   : > { %1947 = vmatprep.subr.bf16.mxu0 %v2144_v12  ;;  %508 = vperm.xlu0 %2136, %v249_v22  }
  0x23   : > { %513 = vperm.xlu1 %2137, %v250_v23  }
  0x25   : > { %1948 = vmatpush3.bf16.msra.mxu0 %v2144_v12 }
  0x26   : > { %1949 = vmatprep.subr.bf16.mxu0 %v2145_v15  ;;  %498 = vperm.xlu0 %2136, %v247_v25  }
  0x27   : > { %503 = vperm.xlu1 %2137, %v248_v26  }
  0x29   : > { %1950 = vmatpush3.bf16.msra.mxu0 %v2145_v15 }
  0x2a   : > { %488 = vperm.xlu0 %2136, %v245_v28   ;;  %1999 = vmatprep.subr.bf16.mxu0 %v2162_v34 }
  0x2b   : > { %493 = vperm.xlu1 %2137, %v246_v29  }
  0x2c   : > { %1952 = vmatmul.mubr.bf16.vlgmr.msra.gmra.mxu0 %v2147_v18 }
  0x2d   : > { %1955 = vmatprep.mubr.bf16.mxu0 %v2148_v21  ;;  %2000 = vmatpush3.bf16.msra.mxu0 %v2162_v34  ;;  %v2474_v34 = vld [vmem:[%s2777_s0 + $0x20] sm:$0xff]  }
  0x2e   : > { %2001 = vmatprep.subr.bf16.mxu0 %v2163_v35 }
  0x31   : > { %2002 = vmatpush3.bf16.msra.mxu0 %v2163_v35  ;;  %v2481_v35 = vld [vmem:[%s2777_s0 + $0x28] sm:$0xff]  }
  0x32   : > { %2003 = vmatprep.subr.bf16.mxu0 %v2164_v36 }
  0x34   : > { %1956 = vmatmul.mubr.bf16.gmra.mxu0 %v2149_v24 }
  0x35   : > { %1959 = vmatprep.mubr.bf16.mxu0 %v2150_v27  ;;  %2004 = vmatpush3.bf16.msra.mxu0 %v2164_v36  ;;  %v2486_v36 = vld [vmem:[%s2777_s0 + $0x30] sm:$0xff]  }
  0x36   : > { %2005 = vmatprep.subr.bf16.mxu0 %v2165_v37 }
  0x39   : > { %2006 = vmatpush3.bf16.msra.mxu0 %v2165_v37  ;;  %v2493_v37 = vld [vmem:[%s2777_s0 + $0x38] sm:$0xff]  }
  0x3c   : > { %1960 = vmatmul.mubr.bf16.gmra.mxu0 %v2151_v30  ;;  %v2457_v30 = vld [vmem:[%s2777_s0 + $0x8] sm:$0xff]  }
  0x3d   : > { %1963 = vmatprep.mubr.bf16.mxu0 %v2152_v31  ;;  %v2462_v31 = vld [vmem:[%s2777_s0 + $0x10] sm:$0xff]  }
  0x44   : > { %1964 = vmatmul.mubr.bf16.gmra.mxu0 %v2153_v32  ;;  %v2469_v32 = vld [vmem:[%s2777_s0 + $0x18] sm:$0xff]  }
  0x89   : > { %v2407_v44 = vpop.permute.xlu0 %558 }
  0x8a   : > { %v2405_v42 = vpop.permute.xlu1 %548 }
  0x8d   : > { %v2411_v49 = vpop.permute.xlu0 %563 }
  0x8e   : > { %v2409_v47 = vpop.permute.xlu1 %553 }
  0x91   : > { %v2415_v54 = vpop.permute.xlu0 %538 }
  0x92   : > { %v2413_v52 = vpop.permute.xlu1 %543 }
  0x95   : > { %v2419_v59 = vpop.permute.xlu0 %528 }
  0x96   : > { %v2417_v57 = vpop.permute.xlu1 %533 }
  0x99   : > { %v2428_v6 = vpop.permute.xlu0 %518 }
  0x9a   : > { %v2425_v3 = vpop.permute.xlu1 %523 }
  0x9d   : > { %v2435_v12 = vpop.permute.xlu0 %508 }
  0x9e   : > { %v2432_v10 = vpop.permute.xlu1 %513 }
  0xa1   : > { %v2442_v19 = vpop.permute.xlu0 %498 }
  0xa2   : > { %v2439_v16 = vpop.permute.xlu1 %503 }
  0xa5   : > { %v2449_v25 = vpop.permute.xlu0 %488 }
  0xa6   : > { %v2446_v23 = vpop.permute.xlu1 %493 }
  0xec   : > { %v1953_v38 = vpop.f32.mrf.mxu0 }
  0xed   : > { %v568_v24 = vmul.f32 %v1953_v38, %v2442_v19  ;;  %v2166_v38 = vld [vmem:[%s2780_s3 + $0x58] sm:$0xff]  }
  0xee   : > { %v2403_v39 = vpop.f32.mrf.mxu0  ;;  %2007 = vmatprep.subr.bf16.mxu0 %v2166_v38 }
  0xef   : > { %v566_v28 = vmul.f32 %v2449_v25, %v2403_v39  ;;  %2008 = vmatpush3.bf16.msra.mxu0 %v2166_v38  ;;  %v2167_v39 = vld [vmem:[%s2780_s3 + $0x50] sm:$0xff]  }
  0xf0   : > { %v1954_v40 = vpop.f32.mrf.mxu0  ;;  %2009 = vmatprep.subr.bf16.mxu0 %v2167_v39 }
  0xf1   : > { %v569_v21 = vmul.f32 %v1954_v40, %v2439_v16  ;;  %v2168_v40 = vld [vmem:[%s2780_s3 + $0x48] sm:$0xff]  }
  0xf2   : > { %v426_v41 = vpop.f32.mrf.mxu0 }
  0xf3   : > { %v583_v26 = vpack.c.bf16 %v569_v21, %v568_v24  ;;  %v567_v27 = vmul.f32 %v2446_v23, %v426_v41  ;;  %2010 = vmatpush3.bf16.msra.mxu0 %v2167_v39 }
  0xf4   : > { %v1957_v43 = vpop.f32.mrf.mxu0  ;;  %2011 = vmatprep.subr.bf16.mxu0 %v2168_v40 }
  0xf5   : > { %v572_v15 = vmul.f32 %v1957_v43, %v2428_v6  ;;  %v582_v29 = vpack.c.bf16 %v567_v27, %v566_v28 }
  0xf6   : > { %v439_v45 = vpop.f32.mrf.mxu0 }
  0xf7   : > { %v570_v20 = vmul.f32 %v2435_v12, %v439_v45  ;;  %2012 = vmatpush3.bf16.msra.mxu0 %v2168_v40 }
  0xf8   : > { %v1958_v46 = vpop.f32.mrf.mxu0 }
  0xf9   : > { %v573_v13 = vmul.f32 %v1958_v46, %v2425_v3 }
  0xfa   : > { %v442_v48 = vpop.f32.mrf.mxu0 }
  0xfb   : > { %v585_v17 = vpack.c.bf16 %v573_v13, %v572_v15  ;;  %v571_v18 = vmul.f32 %v2432_v10, %v442_v48 }
  0xfc   : > { %v1961_v50 = vpop.f32.mrf.mxu0 }
  0xfd   : > { %v576_v7 = vmul.f32 %v1961_v50, %v2415_v54  ;;  %v584_v22 = vpack.c.bf16 %v571_v18, %v570_v20  ;;  %v2514_v50 = vld [vmem:[%s2781_s4] ss:$0 sm:$0xff] }
  0xfe   : > { %v455_v51 = vpop.f32.mrf.mxu0 }
  0xff   : > { %v574_v11 = vmul.f32 %v2419_v59, %v455_v51 }
 0x100   : > { %v1962_v53 = vpop.f32.mrf.mxu0 }
 0x101   : > { %v577_v4 = vmul.f32 %v1962_v53, %v2413_v52 }
 0x102   : > { %v458_v55 = vpop.f32.mrf.mxu0 }
 0x103   : > { %v587_v8 = vpack.c.bf16 %v577_v4, %v576_v7  ;;  %v575_v9 = vmul.f32 %v2417_v57, %v458_v55 }
 0x104   : > { %v1965_v56 = vpop.f32.mrf.mxu0 }
 0x105   : > { %v580_v61 = vmul.f32 %v1965_v56, %v2407_v44  ;;  %v586_v14 = vpack.c.bf16 %v575_v9, %v574_v11 }
 0x106   : > { %v471_v58 = vpop.f32.mrf.mxu0 }
 0x107   : > { %v578_v0 = vmul.f32 %v2405_v42, %v471_v58 }
 0x108   : > { %v1966_v60 = vpop.f32.mrf.mxu0 }
 0x109   : > { %v581_v62 = vmul.f32 %v1966_v60, %v2411_v49 }
 0x10a   : > { %v474_v63 = vpop.f32.mrf.mxu0 }
 0x10b   : > { %v579_v1 = vmul.f32 %v2409_v47, %v474_v63  ;;  %v589_v2 = vpack.c.bf16 %v581_v62, %v580_v61 }
 0x10d   : > { %v588_v5 = vpack.c.bf16 %v579_v1, %v578_v0  ;;  %1967 = vmatprep.subr.bf16.mxu1 %v589_v2 }
 0x10e   : > { %1968 = vmatpush3.bf16.msra.mxu1 %v589_v2 }
 0x10f   : > { %1969 = vmatprep.subr.bf16.mxu1 %v588_v5 }
 0x112   : > { %1970 = vmatpush3.bf16.msra.mxu1 %v588_v5 }
 0x113   : > { %1971 = vmatprep.subr.bf16.mxu1 %v587_v8 }
 0x116   : > { %1972 = vmatpush3.bf16.msra.mxu1 %v587_v8 }
 0x117   : > { %1973 = vmatprep.subr.bf16.mxu1 %v586_v14 }
 0x11a   : > { %1974 = vmatpush3.bf16.msra.mxu1 %v586_v14 }
 0x11b   : > { %1975 = vmatprep.subr.bf16.mxu1 %v585_v17 }
 0x11e   : > { %1976 = vmatpush3.bf16.msra.mxu1 %v585_v17 }
 0x11f   : > { %1977 = vmatprep.subr.bf16.mxu1 %v584_v22 }
 0x122   : > { %1978 = vmatpush3.bf16.msra.mxu1 %v584_v22 }
 0x123   : > { %1979 = vmatprep.subr.bf16.mxu1 %v583_v26 }
 0x126   : > { %1980 = vmatpush3.bf16.msra.mxu1 %v583_v26 }
 0x127   : > { %1981 = vmatprep.subr.bf16.mxu1 %v582_v29 }
 0x12a   : > { %1982 = vmatpush3.bf16.msra.mxu1 %v582_v29 }
 0x12d   : > { %1984 = vmatmul.mubr.bf16.vlgmr.msra.gmra.mxu1 %v2457_v30 }
 0x12e   : > { %1987 = vmatprep.mubr.bf16.mxu1 %v2462_v31 }
 0x135   : > { %1988 = vmatmul.mubr.bf16.gmra.mxu1 %v2469_v32 }
 0x136   : > { %1991 = vmatprep.mubr.bf16.mxu1 %v2474_v34 }
 0x13d   : > { %1992 = vmatmul.mubr.bf16.gmra.mxu1 %v2481_v35 }
 0x13e   : > { %1995 = vmatprep.mubr.bf16.mxu1 %v2486_v36 }
 0x145   : > { %1996 = vmatmul.mubr.bf16.gmra.mxu1 %v2493_v37 }
 0x146   : > { %2047 = vmatprep.mubr.bf16.mxu1 %v2388_v33  ;;  %v2169_v33 = vld [vmem:[%s2780_s3 + $0x40] sm:$0xff]  }
 0x147   : > { %2013 = vmatprep.subr.bf16.mxu0 %v2169_v33 }
 0x148   : > { %2014 = vmatpush3.bf16.msra.mxu0 %v2169_v33 }
 0x1ed   : > { %v1985_v41 = vpop.f32.mrf.mxu1 }
 0x1ee   : > { %v737_v46 = vmul.f32 %v1985_v41, %v2442_v19 }
 0x1ef   : > { %v672_v43 = vpop.f32.mrf.mxu1 }
 0x1f0   : > { %v735_v45 = vmul.f32 %v672_v43, %v2449_v25  ;;  %v760_v60 = vadd.f32 %v2514_v50, %v737_v46 }
 0x1f1   : > { %v1986_v48 = vpop.f32.mrf.mxu1 }
 0x1f2   : > { %v738_v51 = vmul.f32 %v1986_v48, %v2439_v16  ;;  %v758_v55 = vadd.f32 %v2514_v50, %v735_v45  ;;  %v776_v5 = vmax.f32 %v760_v60, 0.0 }
 0x1f3   : > { %v675_v53 = vpop.f32.mrf.mxu1 }
 0x1f4   : > { %v761_v56 = vadd.f32 %v2514_v50, %v738_v51  ;;  %v736_v58 = vmul.f32 %v675_v53, %v2446_v23  ;;  %v774_v1 = vmax.f32 %v758_v55, 0.0 }
 0x1f5   : > { %v1989_v61 = vpop.f32.mrf.mxu1 }
 0x1f6   : > { %v759_v62 = vadd.f32 %v2514_v50, %v736_v58  ;;  %v777_v63 = vmax.f32 %v761_v56, 0.0  ;;  %v741_v7 = vmul.f32 %v1989_v61, %v2428_v6 }
 0x1f7   : > { %v688_v0 = vpop.f32.mrf.mxu1 }
 0x1f8   : > { %v775_v2 = vmax.f32 %v759_v62, 0.0  ;;  %v739_v4 = vmul.f32 %v688_v0, %v2435_v12  ;;  %v791_v13 = vpack.c.bf16 %v777_v63, %v776_v5  ;;  %v764_v20 = vadd.f32 %v2514_v50, %v741_v7 }
 0x1f9   : > { %v1990_v8 = vpop.f32.mrf.mxu1 }
 0x1fa   : > { %v742_v9 = vmul.f32 %v1990_v8, %v2425_v3  ;;  %v790_v11 = vpack.c.bf16 %v775_v2, %v774_v1  ;;  %v762_v15 = vadd.f32 %v2514_v50, %v739_v4  ;;  %v780_v38 = vmax.f32 %v764_v20, 0.0 }
 0x1fb   : > { %v691_v14 = vpop.f32.mrf.mxu1 }
 0x1fc   : > { %v765_v17 = vadd.f32 %v2514_v50, %v742_v9  ;;  %v740_v18 = vmul.f32 %v691_v14, %v2432_v10  ;;  %2015 = vmatprep.mubr.bf16.mxu0 %v790_v11  ;;  %v778_v27 = vmax.f32 %v762_v15, 0.0 }
 0x1fd   : > { %v1993_v21 = vpop.f32.mrf.mxu1  ;;  %2016 = vmatmul.mubr.bf16.vlgmr.msra.gmra.mxu0 %v791_v13 }
 0x1fe   : > { %v763_v22 = vadd.f32 %v2514_v50, %v740_v18  ;;  %v781_v24 = vmax.f32 %v765_v17, 0.0  ;;  %v745_v39 = vmul.f32 %v1993_v21, %v2415_v54 }
 0x1ff   : > { %v704_v26 = vpop.f32.mrf.mxu1 }
 0x200   : > { %v779_v28 = vmax.f32 %v763_v22, 0.0  ;;  %v743_v29 = vmul.f32 %v704_v26, %v2419_v59  ;;  %v793_v45 = vpack.c.bf16 %v781_v24, %v780_v38  ;;  %v768_v53 = vadd.f32 %v2514_v50, %v745_v39  ;;  %v2170_v26 = vld [vmem:[%s2780_s3 + $0xb8] sm:$0xff]  }
 0x201   : > { %v1994_v40 = vpop.f32.mrf.mxu1  ;;  %2063 = vmatprep.subr.bf16.mxu0 %v2170_v26 }
 0x202   : > { %v746_v33 = vmul.f32 %v1994_v40, %v2413_v52  ;;  %v792_v41 = vpack.c.bf16 %v779_v28, %v778_v27  ;;  %v766_v46 = vadd.f32 %v2514_v50, %v743_v29  ;;  %v784_v0 = vmax.f32 %v768_v53, 0.0  ;;  %v2171_v27 = vld [vmem:[%s2780_s3 + $0xb0] sm:$0xff]   ;;  %2064 = vmatpush3.bf16.msra.mxu0 %v2170_v26  ;;  %v2173_v28 = vld [vmem:[%s2780_s3 + $0xa0] sm:$0xff]  }
 0x203   : > { %v707_v43 = vpop.f32.mrf.mxu1  ;;  %2065 = vmatprep.subr.bf16.mxu0 %v2171_v27 }
 0x204   : > { %v769_v48 = vadd.f32 %v2514_v50, %v746_v33  ;;  %v744_v51 = vmul.f32 %v707_v43, %v2417_v57  ;;  %2019 = vmatprep.mubr.bf16.mxu0 %v792_v41  ;;  %v782_v61 = vmax.f32 %v766_v46, 0.0 }
 0x205   : > { %v1997_v55 = vpop.f32.mrf.mxu1  ;;  %2020 = vmatmul.mubr.bf16.gmra.mxu0 %v793_v45 }
 0x206   : > { %v767_v56 = vadd.f32 %v2514_v50, %v744_v51  ;;  %v785_v58 = vmax.f32 %v769_v48, 0.0  ;;  %v749_v1 = vmul.f32 %v1997_v55, %v2407_v44  ;;  %2066 = vmatpush3.bf16.msra.mxu0 %v2171_v27 }
 0x207   : > { %v720_v60 = vpop.f32.mrf.mxu1 }
 0x208   : > { %v783_v62 = vmax.f32 %v767_v56, 0.0  ;;  %v747_v63 = vmul.f32 %v720_v60, %v2405_v42  ;;  %v795_v8 = vpack.c.bf16 %v785_v58, %v784_v0  ;;  %v772_v14 = vadd.f32 %v2514_v50, %v749_v1 }
 0x209   : > { %v1998_v2 = vpop.f32.mrf.mxu1 }
 0x20a   : > { %v750_v4 = vmul.f32 %v1998_v2, %v2411_v49  ;;  %v794_v5 = vpack.c.bf16 %v783_v62, %v782_v61  ;;  %v770_v9 = vadd.f32 %v2514_v50, %v747_v63  ;;  %v788_v21 = vmax.f32 %v772_v14, 0.0 }
 0x20b   : > { %v723_v7 = vpop.f32.mrf.mxu1 }
 0x20c   : > { %v773_v11 = vadd.f32 %v2514_v50, %v750_v4  ;;  %v748_v13 = vmul.f32 %v723_v7, %v2409_v47  ;;  %2023 = vmatprep.mubr.bf16.mxu0 %v794_v5  ;;  %v786_v18 = vmax.f32 %v770_v9, 0.0 }
 0x20d   : > { %2024 = vmatmul.mubr.bf16.gmra.mxu0 %v795_v8 }
 0x20e   : > { %v771_v15 = vadd.f32 %v2514_v50, %v748_v13  ;;  %v789_v17 = vmax.f32 %v773_v11, 0.0  ;;  %v2172_v50 = vld [vmem:[%s2780_s3 + $0xa8] sm:$0xff]  }
 0x20f   : > { %2067 = vmatprep.subr.bf16.mxu0 %v2172_v50 }
 0x210   : > { %v787_v20 = vmax.f32 %v771_v15, 0.0  ;;  %v797_v24 = vpack.c.bf16 %v789_v17, %v788_v21  ;;  %2068 = vmatpush3.bf16.msra.mxu0 %v2172_v50 }
 0x211   : > { %2069 = vmatprep.subr.bf16.mxu0 %v2173_v28 }
 0x212   : > { %v796_v22 = vpack.c.bf16 %v787_v20, %v786_v18 }
 0x214   : > { %2027 = vmatprep.mubr.bf16.mxu0 %v796_v22  ;;  %2070 = vmatpush3.bf16.msra.mxu0 %v2173_v28  ;;  %v2174_v28 = vld [vmem:[%s2780_s3 + $0x98] sm:$0xff]  }
 0x215   : > { %2028 = vmatmul.mubr.bf16.gmra.mxu0 %v797_v24  ;;  %2071 = vmatprep.subr.bf16.mxu0 %v2174_v28 }
 0x218   : > { %2072 = vmatpush3.bf16.msra.mxu0 %v2174_v28 }
 0x2bd   : > { %v2017_v29 = vpop.f32.mrf.mxu0 }
 0x2be   : > { %v962_v22 = vmul.f32 %v2017_v29, %v2442_v19  ;;  %v2182_v29 = vld [vmem:[%s2780_s3 + $0xd8] sm:$0xff]  }
 0x2bf   : > { %v897_v38 = vpop.f32.mrf.mxu0 }
 0x2c0   : > { %v960_v27 = vmul.f32 %v897_v38, %v2449_v25 }
 0x2c1   : > { %v2018_v39 = vpop.f32.mrf.mxu0 }
 0x2c2   : > { %v963_v20 = vmul.f32 %v2018_v39, %v2439_v16 }
 0x2c3   : > { %v900_v40 = vpop.f32.mrf.mxu0 }
 0x2c4   : > { %v977_v24 = vpack.c.bf16 %v963_v20, %v962_v22  ;;  %v961_v26 = vmul.f32 %v900_v40, %v2446_v23 }
 0x2c5   : > { %v2021_v33 = vpop.f32.mrf.mxu0 }
 0x2c6   : > { %v966_v14 = vmul.f32 %v2021_v33, %v2428_v6  ;;  %v976_v50 = vpack.c.bf16 %v961_v26, %v960_v27 }
 0x2c7   : > { %v913_v41 = vpop.f32.mrf.mxu0 }
 0x2c8   : > { %v964_v18 = vmul.f32 %v913_v41, %v2435_v12 }
 0x2c9   : > { %v2022_v43 = vpop.f32.mrf.mxu0 }
 0x2ca   : > { %v967_v11 = vmul.f32 %v2022_v43, %v2425_v3  ;;  %v2613_v43 = vld [vmem:[%s2781_s4 + $0x1] ss:$0 sm:$0xff] }
 0x2cb   : > { %v916_v45 = vpop.f32.mrf.mxu0 }
 0x2cc   : > { %v979_v15 = vpack.c.bf16 %v967_v11, %v966_v14  ;;  %v965_v17 = vmul.f32 %v916_v45, %v2432_v10 }
 0x2cd   : > { %v2025_v46 = vpop.f32.mrf.mxu0 }
 0x2ce   : > { %v970_v5 = vmul.f32 %v2025_v46, %v2415_v54  ;;  %v978_v21 = vpack.c.bf16 %v965_v17, %v964_v18 }
 0x2cf   : > { %v929_v48 = vpop.f32.mrf.mxu0 }
 0x2d0   : > { %v968_v9 = vmul.f32 %v929_v48, %v2419_v59 }
 0x2d1   : > { %v2026_v51 = vpop.f32.mrf.mxu0 }
 0x2d2   : > { %v971_v2 = vmul.f32 %v2026_v51, %v2413_v52 }
 0x2d3   : > { %v932_v53 = vpop.f32.mrf.mxu0 }
 0x2d4   : > { %v981_v7 = vpack.c.bf16 %v971_v2, %v970_v5  ;;  %v969_v8 = vmul.f32 %v932_v53, %v2417_v57 }
 0x2d5   : > { %v2029_v55 = vpop.f32.mrf.mxu0 }
 0x2d6   : > { %v974_v60 = vmul.f32 %v2029_v55, %v2407_v44  ;;  %v980_v13 = vpack.c.bf16 %v969_v8, %v968_v9 }
 0x2d7   : > { %v945_v56 = vpop.f32.mrf.mxu0 }
 0x2d8   : > { %v972_v63 = vmul.f32 %v945_v56, %v2405_v42 }
 0x2d9   : > { %v2030_v58 = vpop.f32.mrf.mxu0 }
 0x2da   : > { %v975_v61 = vmul.f32 %v2030_v58, %v2411_v49 }
 0x2db   : > { %v948_v62 = vpop.f32.mrf.mxu0 }
 0x2dc   : > { %v983_v0 = vpack.c.bf16 %v975_v61, %v974_v60  ;;  %v973_v1 = vmul.f32 %v948_v62, %v2409_v47 }
 0x2de   : > { %v982_v4 = vpack.c.bf16 %v973_v1, %v972_v63  ;;  %2031 = vmatprep.subr.bf16.mxu1 %v983_v0 }
 0x2df   : > { %2032 = vmatpush3.bf16.msra.mxu1 %v983_v0 }
 0x2e0   : > { %2033 = vmatprep.subr.bf16.mxu1 %v982_v4 }
 0x2e3   : > { %2034 = vmatpush3.bf16.msra.mxu1 %v982_v4 }
 0x2e4   : > { %2035 = vmatprep.subr.bf16.mxu1 %v981_v7 }
 0x2e7   : > { %2036 = vmatpush3.bf16.msra.mxu1 %v981_v7 }
 0x2e8   : > { %2037 = vmatprep.subr.bf16.mxu1 %v980_v13 }
 0x2eb   : > { %2038 = vmatpush3.bf16.msra.mxu1 %v980_v13 }
 0x2ec   : > { %2039 = vmatprep.subr.bf16.mxu1 %v979_v15 }
 0x2ef   : > { %2040 = vmatpush3.bf16.msra.mxu1 %v979_v15 }
 0x2f0   : > { %2041 = vmatprep.subr.bf16.mxu1 %v978_v21 }
 0x2f3   : > { %2042 = vmatpush3.bf16.msra.mxu1 %v978_v21 }
 0x2f4   : > { %2043 = vmatprep.subr.bf16.mxu1 %v977_v24 }
 0x2f7   : > { %2044 = vmatpush3.bf16.msra.mxu1 %v977_v24 }
 0x2f8   : > { %2045 = vmatprep.subr.bf16.mxu1 %v976_v50 }
 0x2fb   : > { %2046 = vmatpush3.bf16.msra.mxu1 %v976_v50 }
 0x2fe   : > { %2048 = vmatmul.mubr.bf16.vlgmr.msra.gmra.mxu1 %v2457_v30  ;;  %v2175_v30 = vld [vmem:[%s2780_s3 + $0x90] sm:$0xff]  }
 0x2ff   : > { %2051 = vmatprep.mubr.bf16.mxu1 %v2462_v31  ;;  %2073 = vmatprep.subr.bf16.mxu0 %v2175_v30  ;;  %v2176_v31 = vld [vmem:[%s2780_s3 + $0x88] sm:$0xff]  }
 0x300   : > { %2074 = vmatpush3.bf16.msra.mxu0 %v2175_v30 }
 0x301   : > { %2075 = vmatprep.subr.bf16.mxu0 %v2176_v31 }
 0x304   : > { %2076 = vmatpush3.bf16.msra.mxu0 %v2176_v31 }
 0x306   : > { %2052 = vmatmul.mubr.bf16.gmra.mxu1 %v2469_v32  ;;  %v2177_v32 = vld [vmem:[%s2780_s3 + $0x80] sm:$0xff]  }
 0x307   : > { %2055 = vmatprep.mubr.bf16.mxu1 %v2474_v34  ;;  %2077 = vmatprep.subr.bf16.mxu0 %v2177_v32  ;;  %v2178_v34 = vld [vmem:[%s2780_s3 + $0xf8] sm:$0xff]  }
 0x308   : > { %2078 = vmatpush3.bf16.msra.mxu0 %v2177_v32  ;;  %2095 = vmatprep.subr.bf16.mxu1 %v2178_v34 }
 0x309   : > { %2096 = vmatpush3.bf16.msra.mxu1 %v2178_v34 }
 0x30e   : > { %2056 = vmatmul.mubr.bf16.gmra.mxu1 %v2481_v35  ;;  %v2179_v35 = vld [vmem:[%s2780_s3 + $0xf0] sm:$0xff]  }
 0x30f   : > { %2059 = vmatprep.mubr.bf16.mxu1 %v2486_v36  ;;  %2097 = vmatprep.subr.bf16.mxu1 %v2179_v35  ;;  %v2180_v36 = vld [vmem:[%s2780_s3 + $0xe8] sm:$0xff]  }
 0x310   : > { %2098 = vmatpush3.bf16.msra.mxu1 %v2179_v35 }
 0x311   : > { %2099 = vmatprep.subr.bf16.mxu1 %v2180_v36 }
 0x314   : > { %2100 = vmatpush3.bf16.msra.mxu1 %v2180_v36 }
 0x316   : > { %2060 = vmatmul.mubr.bf16.gmra.mxu1 %v2493_v37  ;;  %v2181_v37 = vld [vmem:[%s2780_s3 + $0xe0] sm:$0xff]  }
 0x317   : > { %2101 = vmatprep.subr.bf16.mxu1 %v2181_v37 }
 0x318   : > { %2102 = vmatpush3.bf16.msra.mxu1 %v2181_v37 }
 0x319   : > { %2103 = vmatprep.subr.bf16.mxu1 %v2182_v29 }
 0x31c   : > { %2104 = vmatpush3.bf16.msra.mxu1 %v2182_v29 }
 0x3be   : > { %v2049_v38 = vpop.f32.mrf.mxu1 }
 0x3bf   : > { %v1083_v33 = vmul.f32 %v2049_v38, %v2442_v19 }
 0x3c0   : > { %v1018_v39 = vpop.f32.mrf.mxu1 }
 0x3c1   : > { %v1081_v40 = vmul.f32 %v1018_v39, %v2449_v25  ;;  %v1107_v55 = vadd.f32 %v2613_v43, %v1083_v33 }
 0x3c2   : > { %v2050_v41 = vpop.f32.mrf.mxu1 }
 0x3c3   : > { %v1084_v45 = vmul.f32 %v2050_v41, %v2439_v16  ;;  %v1105_v48 = vadd.f32 %v2613_v43, %v1081_v40  ;;  %v1123_v63 = vmax.f32 %v1107_v55, 0.0  ;;  %v2183_v55 = vld [vmem:[%s2780_s3 + $0xd0] sm:$0xff]  }
 0x3c4   : > { %v1021_v46 = vpop.f32.mrf.mxu1  ;;  %2105 = vmatprep.subr.bf16.mxu1 %v2183_v55 }
 0x3c5   : > { %v1108_v51 = vadd.f32 %v2613_v43, %v1084_v45  ;;  %v1082_v53 = vmul.f32 %v1021_v46, %v2446_v23  ;;  %v1121_v60 = vmax.f32 %v1105_v48, 0.0  ;;  %2106 = vmatpush3.bf16.msra.mxu1 %v2183_v55 }
 0x3c6   : > { %v2053_v25 = vpop.f32.mrf.mxu1 }
 0x3c7   : > { %v1106_v19 = vadd.f32 %v2613_v43, %v1082_v53  ;;  %v1124_v56 = vmax.f32 %v1108_v51, 0.0  ;;  %v1087_v16 = vmul.f32 %v2053_v25, %v2428_v6 }
 0x3c8   : > { %v1034_v58 = vpop.f32.mrf.mxu1 }
 0x3c9   : > { %v1122_v61 = vmax.f32 %v1106_v19, 0.0  ;;  %v1085_v62 = vmul.f32 %v1034_v58, %v2435_v12  ;;  %v1138_v4 = vpack.c.bf16 %v1124_v56, %v1123_v63  ;;  %v1111_v9 = vadd.f32 %v2613_v43, %v1087_v16  ;;  %v1802_v56 = vld [vmem:[%s2781_s4 + $0x2] ss:$0 sm:$0xff] }
 0x3ca   : > { %v2054_v0 = vpop.f32.mrf.mxu1 }
 0x3cb   : > { %v1088_v1 = vmul.f32 %v2054_v0, %v2425_v3  ;;  %v1137_v2 = vpack.c.bf16 %v1122_v61, %v1121_v60  ;;  %v1109_v5 = vadd.f32 %v2613_v43, %v1085_v62  ;;  %v1127_v17 = vmax.f32 %v1111_v9, 0.0 }
 0x3cc   : > { %v1037_v23 = vpop.f32.mrf.mxu1 }
 0x3cd   : > { %v1112_v7 = vadd.f32 %v2613_v43, %v1088_v1  ;;  %v1086_v8 = vmul.f32 %v1037_v23, %v2432_v10  ;;  %2079 = vmatprep.mubr.bf16.mxu0 %v1137_v2  ;;  %v1125_v14 = vmax.f32 %v1109_v5, 0.0 }
 0x3ce   : > { %v2057_v11 = vpop.f32.mrf.mxu1  ;;  %2080 = vmatmul.mubr.bf16.vlgmr.msra.gmra.mxu0 %v1138_v4 }
 0x3cf   : > { %v1110_v12 = vadd.f32 %v2613_v43, %v1086_v8  ;;  %v1128_v6 = vmax.f32 %v1112_v7, 0.0  ;;  %v1091_v18 = vmul.f32 %v2057_v11, %v2415_v54 }
 0x3d0   : > { %v1050_v13 = vpop.f32.mrf.mxu1 }
 0x3d1   : > { %v1126_v3 = vmax.f32 %v1110_v12, 0.0  ;;  %v1089_v15 = vmul.f32 %v1050_v13, %v2419_v59  ;;  %v1140_v24 = vpack.c.bf16 %v1128_v6, %v1127_v17  ;;  %v1115_v28 = vadd.f32 %v2613_v43, %v1091_v18 }
 0x3d2   : > { %v2058_v20 = vpop.f32.mrf.mxu1 }
 0x3d3   : > { %v1092_v21 = vmul.f32 %v2058_v20, %v2413_v52  ;;  %v1139_v10 = vpack.c.bf16 %v1126_v3, %v1125_v14  ;;  %v1113_v26 = vadd.f32 %v2613_v43, %v1089_v15  ;;  %v1131_v35 = vmax.f32 %v1115_v28, 0.0 }
 0x3d4   : > { %v1053_v22 = vpop.f32.mrf.mxu1 }
 0x3d5   : > { %v1116_v27 = vadd.f32 %v2613_v43, %v1092_v21  ;;  %v1090_v50 = vmul.f32 %v1053_v22, %v2417_v57  ;;  %2083 = vmatprep.mubr.bf16.mxu0 %v1139_v10  ;;  %v1129_v32 = vmax.f32 %v1113_v26, 0.0 }
 0x3d6   : > { %v2061_v30 = vpop.f32.mrf.mxu1  ;;  %2084 = vmatmul.mubr.bf16.gmra.mxu0 %v1140_v24 }
 0x3d7   : > { %v1114_v59 = vadd.f32 %v2613_v43, %v1090_v50  ;;  %v1132_v54 = vmax.f32 %v1116_v27, 0.0  ;;  %v1095_v36 = vmul.f32 %v2061_v30, %v2407_v44 }
 0x3d8   : > { %v1066_v31 = vpop.f32.mrf.mxu1 }
 0x3d9   : > { %v1130_v52 = vmax.f32 %v1114_v59, 0.0  ;;  %v1093_v34 = vmul.f32 %v1066_v31, %v2405_v42  ;;  %v1142_v39 = vpack.c.bf16 %v1132_v54, %v1131_v35  ;;  %v1119_v45 = vadd.f32 %v2613_v43, %v1095_v36 }
 0x3da   : > { %v2062_v37 = vpop.f32.mrf.mxu1 }
 0x3db   : > { %v1096_v29 = vmul.f32 %v2062_v37, %v2411_v49  ;;  %v1141_v57 = vpack.c.bf16 %v1130_v52, %v1129_v32  ;;  %v1117_v40 = vadd.f32 %v2613_v43, %v1093_v34  ;;  %v1135_v51 = vmax.f32 %v1119_v45, 0.0 }
 0x3dc   : > { %v1069_v38 = vpop.f32.mrf.mxu1 }
 0x3dd   : > { %v1120_v33 = vadd.f32 %v2613_v43, %v1096_v29  ;;  %v1094_v41 = vmul.f32 %v1069_v38, %v2409_v47  ;;  %2087 = vmatprep.mubr.bf16.mxu0 %v1141_v57  ;;  %v1133_v44 = vmax.f32 %v1117_v40, 0.0  ;;  %v2184_v47 = vld [vmem:[%s2780_s3 + $0xc8] sm:$0xff]  }
 0x3de   : > { %2088 = vmatmul.mubr.bf16.gmra.mxu0 %v1142_v39  ;;  %2107 = vmatprep.subr.bf16.mxu1 %v2184_v47 }
 0x3df   : > { %v1118_v42 = vadd.f32 %v2613_v43, %v1094_v41  ;;  %v1136_v46 = vmax.f32 %v1120_v33, 0.0  ;;  %2108 = vmatpush3.bf16.msra.mxu1 %v2184_v47  ;;  %v2185_v43 = vld [vmem:[%s2780_s3 + $0xc0] sm:$0xff]  }
 0x3e0   : > { %2109 = vmatprep.subr.bf16.mxu1 %v2185_v43 }
 0x3e1   : > { %v1134_v48 = vmax.f32 %v1118_v42, 0.0  ;;  %v1144_v53 = vpack.c.bf16 %v1136_v46, %v1135_v51 }
 0x3e3   : > { %v1143_v49 = vpack.c.bf16 %v1134_v48, %v1133_v44  ;;  %2110 = vmatpush3.bf16.msra.mxu1 %v2185_v43  ;;  %v1828_v48 = vld [vmem:[%s2781_s4 + $0x3] ss:$0 sm:$0xff] }
 0x3e5   : > { %2091 = vmatprep.mubr.bf16.mxu0 %v1143_v49 }
 0x3e6   : > { %2092 = vmatmul.mubr.bf16.gmra.mxu0 %v1144_v53 }
 0x48e   : > { %v2081_v25 = vpop.f32.mrf.mxu0 }
 0x48f   : > { %v1261_v62 = vadd.f32 %v2081_v25, %v1802_v56 }
 0x490   : > { %v1252_v19 = vpop.f32.mrf.mxu0 }
 0x491   : > { %v1253_v60 = vadd.f32 %v1802_v56, %v1252_v19  ;;  %v1317_v23 = vmax.f32 %v1261_v62, 0.0 }
 0x492   : > { %v2082_v58 = vpop.f32.mrf.mxu0 }
 0x493   : > { %v1264_v61 = vadd.f32 %v2082_v58, %v1802_v56  ;;  %v1315_v2 = vmax.f32 %v1253_v60, 0.0 }
 0x494   : > { %v1255_v63 = vpop.f32.mrf.mxu0 }
 0x495   : > { %v1256_v16 = vadd.f32 %v1802_v56, %v1255_v63  ;;  %v1318_v0 = vmax.f32 %v1264_v61, 0.0 }
 0x496   : > { %v2085_v1 = vpop.f32.mrf.mxu0 }
 0x497   : > { %v1316_v4 = vmax.f32 %v1256_v16, 0.0  ;;  %v1332_v8 = vpack.c.bf16 %v1318_v0, %v1317_v23  ;;  %v1277_v6 = vadd.f32 %v2085_v1, %v1802_v56 }
 0x498   : > { %v1268_v5 = vpop.f32.mrf.mxu0 }
 0x499   : > { %v1331_v7 = vpack.c.bf16 %v1316_v4, %v1315_v2  ;;  %v1269_v11 = vadd.f32 %v1802_v56, %v1268_v5  ;;  %v1321_v20 = vmax.f32 %v1277_v6, 0.0 }
 0x49a   : > { %v2086_v9 = vpop.f32.mrf.mxu0 }
 0x49b   : > { %v1280_v12 = vadd.f32 %v2086_v9, %v1802_v56  ;;  %2111 = vmatprep.mubr.bf16.mxu1 %v1331_v7  ;;  %v1319_v17 = vmax.f32 %v1269_v11, 0.0 }
 0x49c   : > { %v1271_v13 = vpop.f32.mrf.mxu0  ;;  %2112 = vmatmul.mubr.bf16.vlgmr.msra.gmra.mxu1 %v1332_v8 }
 0x49d   : > { %v1272_v14 = vadd.f32 %v1802_v56, %v1271_v13  ;;  %v1322_v3 = vmax.f32 %v1280_v12, 0.0 }
 0x49e   : > { %v2089_v15 = vpop.f32.mrf.mxu0 }
 0x49f   : > { %v1320_v18 = vmax.f32 %v1272_v14, 0.0  ;;  %v1334_v22 = vpack.c.bf16 %v1322_v3, %v1321_v20  ;;  %v1293_v50 = vadd.f32 %v2089_v15, %v1802_v56 }
 0x4a0   : > { %v1284_v21 = vpop.f32.mrf.mxu0 }
 0x4a1   : > { %v1333_v10 = vpack.c.bf16 %v1320_v18, %v1319_v17  ;;  %v1285_v26 = vadd.f32 %v1802_v56, %v1284_v21  ;;  %v1325_v52 = vmax.f32 %v1293_v50, 0.0 }
 0x4a2   : > { %v2090_v24 = vpop.f32.mrf.mxu0 }
 0x4a3   : > { %v1296_v27 = vadd.f32 %v2090_v24, %v1802_v56  ;;  %2115 = vmatprep.mubr.bf16.mxu1 %v1333_v10  ;;  %v1323_v31 = vmax.f32 %v1285_v26, 0.0 }
 0x4a4   : > { %v1287_v28 = vpop.f32.mrf.mxu0  ;;  %2116 = vmatmul.mubr.bf16.gmra.mxu1 %v1334_v22 }
 0x4a5   : > { %v1288_v30 = vadd.f32 %v1802_v56, %v1287_v28  ;;  %v1326_v59 = vmax.f32 %v1296_v27, 0.0 }
 0x4a6   : > { %v2093_v54 = vpop.f32.mrf.mxu0 }
 0x4a7   : > { %v1324_v32 = vmax.f32 %v1288_v30, 0.0  ;;  %v1336_v36 = vpack.c.bf16 %v1326_v59, %v1325_v52  ;;  %v1309_v38 = vadd.f32 %v2093_v54, %v1802_v56 }
 0x4a8   : > { %v1300_v34 = vpop.f32.mrf.mxu0 }
 0x4a9   : > { %v1335_v35 = vpack.c.bf16 %v1324_v32, %v1323_v31  ;;  %v1301_v29 = vadd.f32 %v1802_v56, %v1300_v34  ;;  %v1329_v42 = vmax.f32 %v1309_v38, 0.0 }
 0x4aa   : > { %v2094_v37 = vpop.f32.mrf.mxu0 }
 0x4ab   : > { %v1312_v57 = vadd.f32 %v2094_v37, %v1802_v56  ;;  %2119 = vmatprep.mubr.bf16.mxu1 %v1335_v35  ;;  %v1327_v41 = vmax.f32 %v1301_v29, 0.0 }
 0x4ac   : > { %v1303_v39 = vpop.f32.mrf.mxu0  ;;  %2120 = vmatmul.mubr.bf16.gmra.mxu1 %v1336_v36 }
 0x4ad   : > { %v1304_v40 = vadd.f32 %v1802_v56, %v1303_v39  ;;  %v1330_v33 = vmax.f32 %v1312_v57, 0.0 }
 0x4af   : > { %v1328_v45 = vmax.f32 %v1304_v40, 0.0  ;;  %v1338_v44 = vpack.c.bf16 %v1330_v33, %v1329_v42 }
 0x4b1   : > { %v1337_v46 = vpack.c.bf16 %v1328_v45, %v1327_v41 }
 0x4b3   : > { %2123 = vmatprep.mubr.bf16.mxu1 %v1337_v46 }
 0x4b4   : > { %2124 = vmatmul.mubr.bf16.gmra.mxu1 %v1338_v44 }
 0x55c   : > { %v2113_v51 = vpop.f32.mrf.mxu1 }
 0x55d   : > { %v1455_v49 = vadd.f32 %v2113_v51, %v1828_v48 }
 0x55e   : > { %v1446_v53 = vpop.f32.mrf.mxu1 }
 0x55f   : > { %1513 = vmax.xlane.f32.xlu0 %v1455_v49  ;;  %v1447_v47 = vadd.f32 %v1828_v48, %v1446_v53 }
 0x560   : > { %v2114_v55 = vpop.f32.mrf.mxu1 }
 0x561   : > { %v1458_v56 = vadd.f32 %v2114_v55, %v1828_v48 }
 0x562   : > { %v1449_v43 = vpop.f32.mrf.mxu1 }
 0x563   : > { %v1450_v25 = vadd.f32 %v1828_v48, %v1449_v43  ;;  %1509 = vmax.xlane.f32.xlu0 %v1447_v47 }
 0x564   : > { %v2117_v19 = vpop.f32.mrf.mxu1 }
 0x565   : > { %1511 = vmax.xlane.f32.xlu1 %v1450_v25  ;;  %v1471_v60 = vadd.f32 %v2117_v19, %v1828_v48 }
 0x566   : > { %v1462_v58 = vpop.f32.mrf.mxu1 }
 0x567   : > { %1515 = vmax.xlane.f32.xlu0 %v1458_v56  ;;  %v1463_v16 = vadd.f32 %v1828_v48, %v1462_v58 }
 0x568   : > { %v2118_v61 = vpop.f32.mrf.mxu1 }
 0x569   : > { %v1474_v62 = vadd.f32 %v2118_v61, %v1828_v48  ;;  %1521 = vmax.xlane.f32.xlu1 %v1471_v60 }
 0x56a   : > { %v1465_v63 = vpop.f32.mrf.mxu1 }
 0x56b   : > { %1523 = vmax.xlane.f32.xlu0 %v1474_v62  ;;  %v1466_v1 = vadd.f32 %v1828_v48, %v1465_v63 }
 0x56c   : > { %v2121_v0 = vpop.f32.mrf.mxu1 }
 0x56d   : > { %1517 = vmax.xlane.f32.xlu1 %v1463_v16  ;;  %v1487_v4 = vadd.f32 %v2121_v0, %v1828_v48 }
 0x56e   : > { %v1478_v2 = vpop.f32.mrf.mxu1 }
 0x56f   : > { %1519 = vmax.xlane.f32.xlu0 %v1466_v1  ;;  %v2662_v8 = vadd.f32 %v1828_v48, %v1478_v2 }
 0x570   : > { %v2122_v23 = vpop.f32.mrf.mxu1 }
 0x571   : > { %v2660_v5 = vadd.f32 %v2122_v23, %v1828_v48  ;;  %1529 = vmax.xlane.f32.xlu1 %v1487_v4 }
 0x572   : > { %v1481_v7 = vpop.f32.mrf.mxu1 }
 0x573   : > { %1531 = vmax.xlane.f32.xlu0 %v2660_v5  ;;  %v2665_v11 = vadd.f32 %v1828_v48, %v1481_v7 }
 0x574   : > { %v2125_v9 = vpop.f32.mrf.mxu1 }
 0x575   : > { %1525 = vmax.xlane.f32.xlu1 %v2662_v8  ;;  %v2672_v3 = vadd.f32 %v2125_v9, %v1828_v48 }
 0x576   : > { %v1494_v12 = vpop.f32.mrf.mxu1 }
 0x577   : > { %v2668_v6 = vadd.f32 %v1828_v48, %v1494_v12  ;;  %1527 = vmax.xlane.f32.xlu0 %v2665_v11 }
 0x578   : > { %v2126_v13 = vpop.f32.mrf.mxu1 }
 0x579   : > { %1533 = vmax.xlane.f32.xlu1 %v2668_v6  ;;  %v2678_v17 = vadd.f32 %v2126_v13, %v1828_v48 }
 0x57a   : > { %v1497_v14 = vpop.f32.mrf.mxu1 }
 0x57b   : > { %v2674_v15 = vadd.f32 %v1828_v48, %v1497_v14 }
 0x57d   : > { %1535 = vmax.xlane.f32.xlu0 %v2674_v15  ;;  %1537 = vmax.xlane.f32.xlu1 %v2672_v3 }
 0x581   : > { %1539 = vmax.xlane.f32.xlu0 %v2678_v17 }
 0x5e8   : > { %v1514_v18 = vpop.xlane.xlu0 %1513 }
 0x5e9   : > { %v1543_v20 = vsub.f32 %v1455_v49, %v1514_v18 }
 0x5eb   : > { %v1561_v21 = vmul.f32 1.442695, %v1543_v20 }
 0x5ec   : > { %v1510_v10 = vpop.xlane.xlu0 %1509 }
 0x5ed   : > { %2186 = vpow2.f32 %v1561_v21  ;;  %v1541_v22 = vsub.f32 %v1447_v47, %v1510_v10 }
 0x5ee   : > { %v1512_v24 = vpop.xlane.xlu1 %1511 }
 0x5ef   : > { %v1557_v26 = vmul.f32 1.442695, %v1541_v22  ;;  %v1542_v50 = vsub.f32 %v1450_v25, %v1512_v24 }
 0x5f0   : > { %v1516_v27 = vpop.xlane.xlu0 %1515 }
 0x5f1   : > { %2188 = vpow2.f32 %v1557_v26  ;;  %v1544_v28 = vsub.f32 %v1458_v56, %v1516_v27  ;;  %v1559_v32 = vmul.f32 1.442695, %v1542_v50 }
 0x5f2   : > { %v1522_v30 = vpop.xlane.xlu1 %1521 }
 0x5f3   : > { %v1563_v59 = vmul.f32 1.442695, %v1544_v28  ;;  %v1547_v54 = vsub.f32 %v1471_v60, %v1522_v30 }
 0x5f4   : > { %v1524_v31 = vpop.xlane.xlu0 %1523 }
 0x5f5   : > { %2190 = vpow2.f32 %v1563_v59  ;;  %v1569_v52 = vmul.f32 1.442695, %v1547_v54  ;;  %v1548_v34 = vsub.f32 %v1474_v62, %v1524_v31 }
 0x5f6   : > { %v1518_v35 = vpop.xlane.xlu1 %1517 }
 0x5f7   : > { %2192 = vpow2.f32 %v1569_v52  ;;  %v1545_v36 = vsub.f32 %v1463_v16, %v1518_v35  ;;  %v1571_v29 = vmul.f32 1.442695, %v1548_v34 }
 0x5f8   : > { %v1520_v37 = vpop.xlane.xlu0 %1519  ;;  %2194 = vpow2.f32 %v1559_v32 }
 0x5f9   : > { %v1565_v57 = vmul.f32 1.442695, %v1545_v36  ;;  %v1546_v38 = vsub.f32 %v1466_v1, %v1520_v37 }
 0x5fa   : > { %v2681_v39 = vpop.eup %2186  ;;  %v1530_v40 = vpop.xlane.xlu1 %1529 }
 0x5fb   : > { %2196 = vpow2.f32 %v1565_v57  ;;  %v1551_v33 = vsub.f32 %v1487_v4, %v1530_v40  ;;  %1593 = vadd.xlane.f32.xlu1 %v2681_v39  ;;  %v1567_v45 = vmul.f32 1.442695, %v1546_v38 }
 0x5fc   : > { %v1532_v41 = vpop.xlane.xlu0 %1531  ;;  %2198 = vpow2.f32 %v1571_v29 }
 0x5fd   : > { %v1577_v42 = vmul.f32 1.442695, %v1551_v33  ;;  %v1552_v46 = vsub.f32 %v2660_v5, %v1532_v41 }
 0x5fe   : > { %v2685_v44 = vpop.eup %2188  ;;  %v1526_v48 = vpop.xlane.xlu1 %1525 }
 0x5ff   : > { %2200 = vpow2.f32 %v1577_v42  ;;  %v1549_v51 = vsub.f32 %v2662_v8, %v1526_v48  ;;  %1589 = vadd.xlane.f32.xlu1 %v2685_v44  ;;  %v1579_v53 = vmul.f32 1.442695, %v1552_v46 }
 0x600   : > { %v1528_v49 = vpop.xlane.xlu0 %1527  ;;  %2202 = vpow2.f32 %v1567_v45 }
 0x601   : > { %v1573_v55 = vmul.f32 1.442695, %v1549_v51  ;;  %v1550_v47 = vsub.f32 %v2665_v11, %v1528_v49 }
 0x602   : > { %v2690_v43 = vpop.eup %2190  ;;  %v1534_v25 = vpop.xlane.xlu1 %1533 }
 0x603   : > { %2204 = vpow2.f32 %v1573_v55  ;;  %v1553_v19 = vsub.f32 %v2668_v6, %v1534_v25  ;;  %1595 = vadd.xlane.f32.xlu0 %v2690_v43  ;;  %v1575_v58 = vmul.f32 1.442695, %v1550_v47 }
 0x604   : > { %v2694_v56 = vpop.eup %2192  ;;  %2206 = vpow2.f32 %v1579_v53 }
 0x605   : > { %v1581_v60 = vmul.f32 1.442695, %v1553_v19  ;;  %1601 = vadd.xlane.f32.xlu1 %v2694_v56  ;;  %v2697_v61 = vpop.eup %2194 }
 0x606   : > { %v1536_v62 = vpop.xlane.xlu0 %1535  ;;  %v1538_v63 = vpop.xlane.xlu1 %1537 }
 0x607   : > { %2208 = vpow2.f32 %v1581_v60  ;;  %v1554_v16 = vsub.f32 %v2674_v15, %v1536_v62  ;;  %v1555_v0 = vsub.f32 %v2672_v3, %v1538_v63  ;;  %1591 = vadd.xlane.f32.xlu0 %v2697_v61 }
 0x608   : > { %v2702_v1 = vpop.eup %2196  ;;  %2210 = vpow2.f32 %v1575_v58 }
 0x609   : > { %v1583_v2 = vmul.f32 1.442695, %v1554_v16  ;;  %v1585_v4 = vmul.f32 1.442695, %v1555_v0  ;;  %1597 = vadd.xlane.f32.xlu1 %v2702_v1  ;;  %v2705_v23 = vpop.eup %2198 }
 0x60a   : > { %v1540_v5 = vpop.xlane.xlu0 %1539 }
 0x60b   : > { %v1556_v7 = vsub.f32 %v2678_v17, %v1540_v5  ;;  %1603 = vadd.xlane.f32.xlu0 %v2705_v23  ;;  %2212 = vpow2.f32 %v1585_v4 }
 0x60c   : > { %v2709_v8 = vpop.eup %2200  ;;  %2214 = vpow2.f32 %v1583_v2 }
 0x60d   : > { %v1587_v9 = vmul.f32 1.442695, %v1556_v7  ;;  %1609 = vadd.xlane.f32.xlu1 %v2709_v8  ;;  %v2712_v11 = vpop.eup %2202 }
 0x60f   : > { %1599 = vadd.xlane.f32.xlu0 %v2712_v11  ;;  %2216 = vpow2.f32 %v1587_v9 }
 0x610   : > { %v2715_v12 = vpop.eup %2204 }
 0x611   : > { %1605 = vadd.xlane.f32.xlu1 %v2715_v12  ;;  %v2718_v6 = vpop.eup %2206 }
 0x613   : > { %1611 = vadd.xlane.f32.xlu0 %v2718_v6 }
 0x614   : > { %v2721_v13 = vpop.eup %2208 }
 0x615   : > { %1613 = vadd.xlane.f32.xlu1 %v2721_v13  ;;  %v2724_v14 = vpop.eup %2210 }
 0x617   : > { %1607 = vadd.xlane.f32.xlu0 %v2724_v14 }
 0x618   : > { %v2727_v3 = vpop.eup %2212 }
 0x619   : > { %v2729_v15 = vpop.eup %2214  ;;  %1617 = vadd.xlane.f32.xlu1 %v2727_v3 }
 0x61b   : > { %1615 = vadd.xlane.f32.xlu0 %v2729_v15 }
 0x61c   : > { %v2733_v17 = vpop.eup %2216 }
 0x61f   : > { %1619 = vadd.xlane.f32.xlu0 %v2733_v17 }
 0x684   : > { %v1594_v18 = vpop.xlane.xlu1 %1593 }
 0x685   : > { %2218 = vrcp.f32 %v1594_v18 }
 0x688   : > { %v1590_v20 = vpop.xlane.xlu1 %1589 }
 0x689   : > { %2220 = vrcp.f32 %v1590_v20 }
 0x68c   : > { %v1596_v21 = vpop.xlane.xlu0 %1595 }
 0x68d   : > { %2222 = vrcp.f32 %v1596_v21 }
 0x68e   : > { %v1602_v10 = vpop.xlane.xlu1 %1601 }
 0x68f   : > { %2224 = vrcp.f32 %v1602_v10 }
 0x690   : > { %v1592_v22 = vpop.xlane.xlu0 %1591 }
 0x691   : > { %2226 = vrcp.f32 %v1592_v22 }
 0x692   : > { %v2219_v24 = vpop.eup %2218  ;;  %v1598_v26 = vpop.xlane.xlu1 %1597 }
 0x693   : > { %v1626_v27 = vmul.f32 %v2219_v24, %v2681_v39  ;;  %2228 = vrcp.f32 %v1598_v26 }
 0x694   : > { %v1604_v50 = vpop.xlane.xlu0 %1603 }
 0x695   : > { %1655 = vst [vmem:[%s2740_s30 + $0x10] sm:$0xff] %v1626_v27  ;;  %2230 = vrcp.f32 %v1604_v50 }
 0x696   : > { %v2221_v28 = vpop.eup %2220  ;;  %v1610_v30 = vpop.xlane.xlu1 %1609 }
 0x697   : > { %v1622_v59 = vmul.f32 %v2221_v28, %v2685_v44  ;;  %2232 = vrcp.f32 %v1610_v30 }
 0x698   : > { %v1600_v54 = vpop.xlane.xlu0 %1599 }
 0x699   : > { %1653 = vst [vmem:[%s2740_s30] sm:$0xff] %v1622_v59  ;;  %2234 = vrcp.f32 %v1600_v54 }
 0x69a   : > { %v2223_v31 = vpop.eup %2222  ;;  %v1606_v32 = vpop.xlane.xlu1 %1605 }
 0x69b   : > { %v1628_v52 = vmul.f32 %v2223_v31, %v2690_v43  ;;  %2236 = vrcp.f32 %v1606_v32 }
 0x69c   : > { %v2225_v34 = vpop.eup %2224  ;;  %v1612_v35 = vpop.xlane.xlu0 %1611 }
 0x69d   : > { %1656 = vst [vmem:[%s2740_s30 + $0x18] sm:$0xff] %v1628_v52  ;;  %v1634_v36 = vmul.f32 %v2225_v34, %v2694_v56  ;;  %2238 = vrcp.f32 %v1612_v35 }
 0x69e   : > { %v2227_v37 = vpop.eup %2226  ;;  %v1614_v29 = vpop.xlane.xlu1 %1613 }
 0x69f   : > { %1659 = vst [vmem:[%s2740_s30 + $0x30] sm:$0xff] %v1634_v36  ;;  %v1624_v57 = vmul.f32 %v2227_v37, %v2697_v61  ;;  %2240 = vrcp.f32 %v1614_v29 }
 0x6a0   : > { %v2229_v38 = vpop.eup %2228  ;;  %v1608_v39 = vpop.xlane.xlu0 %1607 }
 0x6a1   : > { %1654 = vst [vmem:[%s2740_s30 + $0x8] sm:$0xff] %v1624_v57  ;;  %v1630_v40 = vmul.f32 %v2229_v38, %v2702_v1  ;;  %2242 = vrcp.f32 %v1608_v39 }
 0x6a2   : > { %v2231_v33 = vpop.eup %2230  ;;  %v1618_v45 = vpop.xlane.xlu1 %1617 }
 0x6a3   : > { %1657 = vst [vmem:[%s2740_s30 + $0x20] sm:$0xff] %v1630_v40  ;;  %v1636_v41 = vmul.f32 %v2231_v33, %v2705_v23  ;;  %2244 = vrcp.f32 %v1618_v45 }
 0x6a4   : > { %v2233_v42 = vpop.eup %2232  ;;  %v1616_v46 = vpop.xlane.xlu0 %1615 }
 0x6a5   : > { %1660 = vst [vmem:[%s2740_s30 + $0x38] sm:$0xff] %v1636_v41  ;;  %v1642_v44 = vmul.f32 %v2233_v42, %v2709_v8  ;;  %2246 = vrcp.f32 %v1616_v46 }
 0x6a6   : > { %v2235_v48 = vpop.eup %2234 }
 0x6a7   : > { %1663 = vst [vmem:[%s2740_s30 + $0x50] sm:$0xff] %v1642_v44  ;;  %v1632_v51 = vmul.f32 %v2235_v48, %v2712_v11 }
 0x6a8   : > { %v2237_v49 = vpop.eup %2236  ;;  %v1620_v53 = vpop.xlane.xlu0 %1619 }
 0x6a9   : > { %1658 = vst [vmem:[%s2740_s30 + $0x28] sm:$0xff] %v1632_v51  ;;  %v1638_v55 = vmul.f32 %v2237_v49, %v2715_v12  ;;  %2248 = vrcp.f32 %v1620_v53 }
 0x6aa   : > { %v2239_v47 = vpop.eup %2238 }
 0x6ab   : > { %1661 = vst [vmem:[%s2740_s30 + $0x40] sm:$0xff] %v1638_v55  ;;  %v1644_v43 = vmul.f32 %v2239_v47, %v2718_v6 }
 0x6ac   : > { %v2241_v25 = vpop.eup %2240 }
 0x6ad   : > { %1664 = vst [vmem:[%s2740_s30 + $0x58] sm:$0xff] %v1644_v43  ;;  %v1646_v19 = vmul.f32 %v2241_v25, %v2721_v13 }
 0x6ae   : > { %v2243_v56 = vpop.eup %2242 }
 0x6af   : > { %1665 = vst [vmem:[%s2740_s30 + $0x60] sm:$0xff] %v1646_v19  ;;  %v1640_v58 = vmul.f32 %v2243_v56, %v2724_v14 }
 0x6b0   : > { %v2245_v60 = vpop.eup %2244 }
 0x6b1   : > { %1662 = vst [vmem:[%s2740_s30 + $0x48] sm:$0xff] %v1640_v58  ;;  %v1650_v62 = vmul.f32 %v2245_v60, %v2727_v3 }
 0x6b2   : > { %v2247_v61 = vpop.eup %2246 }
 0x6b3   : > { %v1648_v63 = vmul.f32 %v2247_v61, %v2729_v15  ;;  %1667 = vst [vmem:[%s2740_s30 + $0x70] sm:$0xff] %v1650_v62 }
 0x6b5   : > { %1666 = vst [vmem:[%s2740_s30 + $0x68] sm:$0xff] %v1648_v63 }
 0x6b6   : > { %v2249_v16 = vpop.eup %2248 }
 0x6b7   : > { %v1652_v0 = vmul.f32 %v2249_v16, %v2733_v17 }
 0x6b9   : > { %1668 = vst [vmem:[%s2740_s30 + $0x78] sm:$0xff] %v1652_v0 }
 0x6ba PF: > { %s15_s18 = sadd.s32 1, %s2256_s18  }
 0x6bb   : > { %p12_p4 = scmp.ge.s32.totalorder %s15_s18, 4  }
 0x6bd   :  { %14 = sbr.rel (!%p12_p4) target bundleno = 1 (0x1), region = 76 }

</bundles_post_ra>
